<compile_context>
chip_gen: v7x
topology: tpu7x:2x2x1
jax: 0.10.0
libtpu: 0.0.40
codegen_flags: <defaults>
</compile_context>

<pallas_src>
import functools
import math

import jax
import jax.numpy as jnp
from jax.experimental import pallas as pl

# ---------------- model config (small, consistent with the module) ----------
D_MODEL = 32
NHEAD = 4
DIM_FF = 64
B = 2            # batch
L_TGT = 8        # number of decoder queries
L_MEM = 16       # memory (image feature) length
LN_EPS = 1e-5

# ---- slab layout (static indices) -------------------------------------------
_W_SA_QKV, _W_SA_O, _W_CA_Q, _W_CA_KV, _W_CA_O, _W_L1, _W_L2 = range(7)
(_B_SA_QKV, _B_SA_O, _B_CA_Q, _B_CA_KV, _B_CA_O, _B_L1, _B_L2,
 _N1_W, _N1_B, _N3_W, _N3_B, _N4_W, _N4_B) = range(13)


# ---------------- in-kernel helpers -----------------------------------------
def _layer_norm(x, w, b):
    """LayerNorm over last dim, f32 math (matches nn.LayerNorm eval)."""
    mu = jnp.mean(x, axis=-1, keepdims=True)
    var = jnp.mean((x - mu) ** 2, axis=-1, keepdims=True)
    return (x - mu) * jax.lax.rsqrt(var + LN_EPS) * w + b


def _attention(q, k, v, w_out_t, b_out, nhead, b, lq, lk):
    """Multi-head attention core (no masks, eval mode).

    q: (b*lq, D) f32 (bias already added), k/v: (b*lk, D) f32.
    w_out_t: (D, D) bf16, pre-transposed out_proj weight (y = o @ w_out_t).
    b_out:   (1, D) f32.

    Head outputs are concatenated along the lane axis and folded through a
    single K=D out-projection matmul (one MXU op instead of nhead K=hd ops).
    """
    d = q.shape[-1]
    hd = d // nhead
    scale = 1.0 / math.sqrt(hd)

    q3 = (q * scale).reshape(b, lq, d)     # sublane-aligned leading-dim split
    k3 = k.reshape(b, lk, d)
    v3 = v.reshape(b, lk, d)

    head_outs = []
    for h in range(nhead):                 # static python loop over heads
        sl = slice(h * hd, (h + 1) * hd)
        qh = q3[..., sl].astype(jnp.bfloat16)
        kh = k3[..., sl].astype(jnp.bfloat16)
        vh = v3[..., sl].astype(jnp.bfloat16)

        s = jnp.einsum('bqd,bkd->bqk', qh, kh,
                       preferred_element_type=jnp.float32)          # (b,lq,lk)
        s = s - jnp.max(s, axis=-1, keepdims=True)
        p = jnp.exp(s)
        p = p * pl.reciprocal(jnp.sum(p, axis=-1, keepdims=True), approx=True)

        oh = jnp.einsum('bqk,bkd->bqd', p.astype(jnp.bfloat16), vh,
                        preferred_element_type=jnp.float32)         # (b,lq,hd)
        head_outs.append(oh)

    o = jnp.concatenate(head_outs, axis=-1).reshape(b * lq, d)      # (b*lq, D)
    return jnp.dot(o.astype(jnp.bfloat16), w_out_t,
                   preferred_element_type=jnp.float32) + b_out


# ---------------- the fused decoder-layer kernel -----------------------------
def decoder_layer_kernel(tgt_ref, qpos_ref, mem_ref, pos_ref, w_ref, b_ref,
                         out_ref, *, nhead, b, lt, lm):
    d = tgt_ref.shape[-1]
    dff = DIM_FF

    tgt = tgt_ref[...]      # (b*lt, d) f32
    qpos = qpos_ref[...]    # (b*lt, d)
    mem = mem_ref[...]      # (b*lm, d)
    pos = pos_ref[...]      # (b*lm, d)

    # ---- unpack weights (static slab index + static slices, bf16) ----------
    w_sa_qkv = w_ref[_W_SA_QKV][:, :3 * d]        # (2d, 3d)
    w_sa_o = w_ref[_W_SA_O][:d, :d]               # (d, d)
    w_ca_q = w_ref[_W_CA_Q][:d, :d]               # (d, d)
    w_ca_kv = w_ref[_W_CA_KV][:, :2 * d]          # (2d, 2d)
    w_ca_o = w_ref[_W_CA_O][:d, :d]               # (d, d)
    w_l1 = w_ref[_W_L1][:d, :dff]                 # (d, dff)
    w_l2 = w_ref[_W_L2][:, :d]                    # (dff, d)

    # ---- unpack biases / LayerNorm params (f32 slab rows) -------------------
    bslab = b_ref[...]

    def brow(i, n):
        return bslab[i:i + 1, :n]                 # (1, n)

    b_sa_qkv = brow(_B_SA_QKV, 3 * d)
    b_sa_o = brow(_B_SA_O, d)
    b_ca_q = brow(_B_CA_Q, d)
    b_ca_kv = brow(_B_CA_KV, 2 * d)
    b_ca_o = brow(_B_CA_O, d)
    b_l1 = brow(_B_L1, dff)
    b_l2 = brow(_B_L2, d)
    n1_w, n1_b = brow(_N1_W, d), brow(_N1_B, d)
    n3_w, n3_b = brow(_N3_W, d), brow(_N3_B, d)
    n4_w, n4_b = brow(_N4_W, d), brow(_N4_B, d)

    # ---- self-attention: q = k = tgt + query_pos, v = tgt -------------------
    # block-diagonal fused [q|k|v] projection, one K=2d matmul
    sa_in = jnp.concatenate([tgt + qpos, tgt], axis=-1).astype(jnp.bfloat16)
    qkv = jnp.dot(sa_in, w_sa_qkv,
                  preferred_element_type=jnp.float32) + b_sa_qkv    # (b*lt, 3d)
    sa = _attention(qkv[:, :d], qkv[:, d:2 * d], qkv[:, 2 * d:],
                    w_sa_o, b_sa_o, nhead, b, lt, lt)
    x = _layer_norm(tgt + sa, n1_w, n1_b)

    # ---- cross-attention over image memory ----------------------------------
    q_ca = jnp.dot((x + qpos).astype(jnp.bfloat16), w_ca_q,
                   preferred_element_type=jnp.float32) + b_ca_q     # (b*lt, d)
    ca_in = jnp.concatenate([mem + pos, mem], axis=-1).astype(jnp.bfloat16)
    kv = jnp.dot(ca_in, w_ca_kv,
                 preferred_element_type=jnp.float32) + b_ca_kv      # (b*lm, 2d)
    ca = _attention(q_ca, kv[:, :d], kv[:, d:],
                    w_ca_o, b_ca_o, nhead, b, lt, lm)
    x = _layer_norm(x + ca, n3_w, n3_b)

    # ---- FFN: linear1 -> relu -> linear2 ------------------------------------
    h = jnp.dot(x.astype(jnp.bfloat16), w_l1,
                preferred_element_type=jnp.float32) + b_l1
    h = jnp.maximum(h, 0.0)
    f = jnp.dot(h.astype(jnp.bfloat16), w_l2,
                preferred_element_type=jnp.float32) + b_l2
    x = _layer_norm(x + f, n4_w, n4_b)

    out_ref[...] = x


# ---------------- one-time host-side weight packing ---------------------------
def prepare_params(params, d=D_MODEL, dff=DIM_FF):
    """Pack all weights/biases into two slabs. Run ONCE (weights are static at
    inference) so no per-call XLA weight-prep ops remain in the jitted path."""
    f32 = jnp.float32
    z = lambda r, c: jnp.zeros((r, c), f32)
    T = lambda w: jnp.asarray(w, f32).T

    sa_w, sa_b = params["sa_in_w"], params["sa_in_b"]
    wq, wk, wv = sa_w[:d], sa_w[d:2 * d], sa_w[2 * d:]
    # blockdiag([Wq^T | Wk^T], Wv^T): rows 0:d act on (tgt+qpos), rows d:2d on tgt
    w_sa_qkv = jnp.concatenate(
        [jnp.concatenate([T(wq), T(wk), z(d, d)], axis=1),
         jnp.concatenate([z(d, 2 * d), T(wv)], axis=1)], axis=0)    # (2d, 3d)

    ca_w, ca_b = params["ca_in_w"], params["ca_in_b"]
    cwq, cwk, cwv = ca_w[:d], ca_w[d:2 * d], ca_w[2 * d:]
    w_ca_kv = jnp.concatenate(
        [jnp.concatenate([T(cwk), z(d, d)], axis=1),
         jnp.concatenate([z(d, d), T(cwv)], axis=1)], axis=0)       # (2d, 2d)

    mats = [w_sa_qkv, T(params["sa_out_w"]), T(cwq), w_ca_kv,
            T(params["ca_out_w"]), T(params["l1_w"]), T(params["l2_w"])]

    def pad(w):
        r, c = w.shape
        return jnp.pad(w, ((0, 2 * d - r), (0, 128 - c)))
    w_slab = jnp.stack([pad(m) for m in mats]).astype(jnp.bfloat16)  # (7,2d,128)

    rows = [sa_b[0],                    # [bq | bk | bv] packed qkv bias
            params["sa_out_b"][0],
            ca_b[0, :d],                # cross-attn q bias
            ca_b[0, d:],                # cross-attn [bk | bv] packed bias
            params["ca_out_b"][0],
            params["l1_b"][0], params["l2_b"][0],
            params["n1_w"][0], params["n1_b"][0],
            params["n3_w"][0], params["n3_b"][0],
            params["n4_w"][0], params["n4_b"][0]]
    b_slab = jnp.zeros((16, 128), f32)
    for i, r in enumerate(rows):
        b_slab = b_slab.at[i, :r.shape[0]].set(jnp.asarray(r, f32))
    return w_slab, b_slab


# ---------------- wrapper (this is what gets jitted per call) -----------------
def transformer_decoder_layer(tgt, memory, query_pos, pos, w_slab, b_slab,
                              nhead=NHEAD):
    """tgt/query_pos: (B, L_TGT, D), memory/pos: (B, L_MEM, D) -> (B, L_TGT, D)."""
    b, lt, d = tgt.shape
    lm = memory.shape[1]

    kernel = functools.partial(decoder_layer_kernel,
                               nhead=nhead, b=b, lt=lt, lm=lm)

    # Grid-less: whole batch in one invocation, everything resident in VMEM
    # (total footprint « 1 MiB on every TPU generation). Inputs/outputs are
    # flattened to (rows, D) slabs; the reshapes are metadata-only.
    out2d = pl.pallas_call(
        kernel,
        out_shape=jax.ShapeDtypeStruct((b * lt, d), jnp.float32),
    )(tgt.reshape(b * lt, d), query_pos.reshape(b * lt, d),
      memory.reshape(b * lm, d), pos.reshape(b * lm, d),
      w_slab, b_slab)
    return out2d.reshape(b, lt, d)


# ---------------- pure-JAX reference (f32) ------------------------------------
def reference_forward(tgt, memory, query_pos, pos, params, nhead=NHEAD):
    d = tgt.shape[-1]
    hd = d // nhead

    def mha(q_in, k_in, v_in, in_w, in_b, out_w, out_b):
        wq, wk, wv = in_w[:d], in_w[d:2 * d], in_w[2 * d:]
        bq, bk, bv = in_b[:, :d], in_b[:, d:2 * d], in_b[:, 2 * d:]
        q = jnp.einsum('bld,ed->ble', q_in, wq) + bq
        k = jnp.einsum('bld,ed->ble', k_in, wk) + bk
        v = jnp.einsum('bld,ed->ble', v_in, wv) + bv
        bsz, lq, _ = q.shape
        lk = k.shape[1]
        q = q.reshape(bsz, lq, nhead, hd).transpose(0, 2, 1, 3) / math.sqrt(hd)
        k = k.reshape(bsz, lk, nhead, hd).transpose(0, 2, 1, 3)
        v = v.reshape(bsz, lk, nhead, hd).transpose(0, 2, 1, 3)
        s = jnp.einsum('bhqd,bhkd->bhqk', q, k)
        p = jax.nn.softmax(s, axis=-1)
        o = jnp.einsum('bhqk,bhkd->bhqd', p, v)
        o = o.transpose(0, 2, 1, 3).reshape(bsz, lq, d)
        return jnp.einsum('bld,ed->ble', o, out_w) + out_b

    def ln(x, w, b):
        mu = jnp.mean(x, axis=-1, keepdims=True)
        var = jnp.mean((x - mu) ** 2, axis=-1, keepdims=True)
        return (x - mu) / jnp.sqrt(var + LN_EPS) * w + b

    qk = tgt + query_pos
    sa = mha(qk, qk, tgt, params["sa_in_w"], params["sa_in_b"],
             params["sa_out_w"], params["sa_out_b"])
    x = ln(tgt + sa, params["n1_w"], params["n1_b"])
    ca = mha(x + query_pos, memory + pos, memory, params["ca_in_w"],
             params["ca_in_b"], params["ca_out_w"], params["ca_out_b"])
    x = ln(x + ca, params["n3_w"], params["n3_b"])
    h = jnp.maximum(jnp.einsum('bld,fd->blf', x, params["l1_w"]) + params["l1_b"], 0.0)
    f = jnp.einsum('blf,df->bld', h, params["l2_w"]) + params["l2_b"]
    return ln(x + f, params["n4_w"], params["n4_b"])


# ---------------- deterministic parameter init --------------------------------
def make_params(key):
    keys = jax.random.split(key, 16)

    def w(k, shape, scale=0.05):
        return jax.random.normal(k, shape, jnp.float32) * scale

    return {
        # self-attention (packed q/k/v in_proj like PyTorch)
        "sa_in_w":  w(keys[0], (3 * D_MODEL, D_MODEL)),
        "sa_in_b":  w(keys[1], (1, 3 * D_MODEL)),
        "sa_out_w": w(keys[2], (D_MODEL, D_MODEL)),
        "sa_out_b": w(keys[3], (1, D_MODEL)),
        # cross-attention (image)
        "ca_in_w":  w(keys[4], (3 * D_MODEL, D_MODEL)),
        "ca_in_b":  w(keys[5], (1, 3 * D_MODEL)),
        "ca_out_w": w(keys[6], (D_MODEL, D_MODEL)),
        "ca_out_b": w(keys[7], (1, D_MODEL)),
        # FFN
        "l1_w": w(keys[8], (DIM_FF, D_MODEL)),
        "l1_b": w(keys[9], (1, DIM_FF)),
        "l2_w": w(keys[10], (D_MODEL, DIM_FF)),
        "l2_b": w(keys[11], (1, D_MODEL)),
        # layer norms (PyTorch init: weight=1, bias=0)
        "n1_w": jnp.ones((1, D_MODEL), jnp.float32),
        "n1_b": jnp.zeros((1, D_MODEL), jnp.float32),
        "n3_w": jnp.ones((1, D_MODEL), jnp.float32),
        "n3_b": jnp.zeros((1, D_MODEL), jnp.float32),
        "n4_w": jnp.ones((1, D_MODEL), jnp.float32),
        "n4_b": jnp.zeros((1, D_MODEL), jnp.float32),
    }


if __name__ == "__main__":
    key = jax.random.PRNGKey(0)
    k_tgt, k_mem, k_qp, k_pos, k_par = jax.random.split(key, 5)

    # batch-major inputs (see layout comment at top)
    tgt = jax.random.normal(k_tgt, (B, L_TGT, D_MODEL), jnp.float32)
    memory = jax.random.normal(k_mem, (B, L_MEM, D_MODEL), jnp.float32)
    query_pos = jax.random.normal(k_qp, (B, L_TGT, D_MODEL), jnp.float32)
    pos = jax.random.normal(k_pos, (B, L_MEM, D_MODEL), jnp.float32)

    params = make_params(k_par)

    # one-time weight packing (hoisted out of the per-call forward)
    w_slab, b_slab = jax.block_until_ready(prepare_params(params))

    fn = jax.jit(transformer_decoder_layer)
    out = fn(tgt, memory, query_pos, pos, w_slab, b_slab)
    jax.block_until_ready(out)
    assert out.shape == (B, L_TGT, D_MODEL)

    # loose tolerance reference check (kernel uses bf16 MXU operands + approx
    # reciprocal in the softmax; everything else is f32)
    ref = reference_forward(tgt, memory, query_pos, pos, params)
    err = float(jnp.max(jnp.abs(out - ref)))
    assert err < 1e-1, f"kernel/reference mismatch: max abs err = {err}"

    print("KERNEL_OK")
</pallas_src>

<mosaic_0001>
module attributes {stable_mosaic.version = 11 : i64} {
  func.func @decoder_layer_kernel(%arg0: memref<16x32xf32, #tpu.memory_space<vmem>>, %arg1: memref<16x32xf32, #tpu.memory_space<vmem>>, %arg2: memref<32x32xf32, #tpu.memory_space<vmem>>, %arg3: memref<32x32xf32, #tpu.memory_space<vmem>>, %arg4: memref<7x64x128xbf16, #tpu.memory_space<vmem>>, %arg5: memref<16x128xf32, #tpu.memory_space<vmem>>, %arg6: memref<16x32xf32, #tpu.memory_space<vmem>>) attributes {dimension_semantics = [], scalar_prefetch = 0 : i64, scratch_operands = 0 : i64, tpu.core_type = #tpu.core_type<tc>} {
    %c0 = arith.constant 0 : index
    %c0_0 = arith.constant 0 : index
    %0 = vector.load %arg0[%c0, %c0_0] : memref<16x32xf32, #tpu.memory_space<vmem>>, vector<16x32xf32>
    %c0_1 = arith.constant 0 : index
    %c0_2 = arith.constant 0 : index
    %1 = vector.load %arg1[%c0_1, %c0_2] : memref<16x32xf32, #tpu.memory_space<vmem>>, vector<16x32xf32>
    %c0_3 = arith.constant 0 : index
    %c0_4 = arith.constant 0 : index
    %2 = vector.load %arg2[%c0_3, %c0_4] : memref<32x32xf32, #tpu.memory_space<vmem>>, vector<32x32xf32>
    %c0_5 = arith.constant 0 : index
    %c0_6 = arith.constant 0 : index
    %3 = vector.load %arg3[%c0_5, %c0_6] : memref<32x32xf32, #tpu.memory_space<vmem>>, vector<32x32xf32>
    %c0_7 = arith.constant 0 : index
    %c0_8 = arith.constant 0 : index
    %c0_9 = arith.constant 0 : index
    %4 = vector.load %arg4[%c0_7, %c0_8, %c0_9] : memref<7x64x128xbf16, #tpu.memory_space<vmem>>, vector<1x64x128xbf16>
    %5 = vector.shape_cast %4 : vector<1x64x128xbf16> to vector<64x128xbf16>
    %6 = vector.extract_strided_slice %5 {offsets = [0, 0], sizes = [64, 96], strides = [1, 1]} : vector<64x128xbf16> to vector<64x96xbf16>
    %c1 = arith.constant 1 : index
    %c0_10 = arith.constant 0 : index
    %c0_11 = arith.constant 0 : index
    %7 = vector.load %arg4[%c1, %c0_10, %c0_11] : memref<7x64x128xbf16, #tpu.memory_space<vmem>>, vector<1x64x128xbf16>
    %8 = vector.shape_cast %7 : vector<1x64x128xbf16> to vector<64x128xbf16>
    %9 = vector.extract_strided_slice %8 {offsets = [0, 0], sizes = [32, 32], strides = [1, 1]} : vector<64x128xbf16> to vector<32x32xbf16>
    %c2 = arith.constant 2 : index
    %c0_12 = arith.constant 0 : index
    %c0_13 = arith.constant 0 : index
    %10 = vector.load %arg4[%c2, %c0_12, %c0_13] : memref<7x64x128xbf16, #tpu.memory_space<vmem>>, vector<1x64x128xbf16>
    %11 = vector.shape_cast %10 : vector<1x64x128xbf16> to vector<64x128xbf16>
    %12 = vector.extract_strided_slice %11 {offsets = [0, 0], sizes = [32, 32], strides = [1, 1]} : vector<64x128xbf16> to vector<32x32xbf16>
    %c3 = arith.constant 3 : index
    %c0_14 = arith.constant 0 : index
    %c0_15 = arith.constant 0 : index
    %13 = vector.load %arg4[%c3, %c0_14, %c0_15] : memref<7x64x128xbf16, #tpu.memory_space<vmem>>, vector<1x64x128xbf16>
    %14 = vector.shape_cast %13 : vector<1x64x128xbf16> to vector<64x128xbf16>
    %15 = vector.extract_strided_slice %14 {offsets = [0, 0], sizes = [64, 64], strides = [1, 1]} : vector<64x128xbf16> to vector<64x64xbf16>
    %c4 = arith.constant 4 : index
    %c0_16 = arith.constant 0 : index
    %c0_17 = arith.constant 0 : index
    %16 = vector.load %arg4[%c4, %c0_16, %c0_17] : memref<7x64x128xbf16, #tpu.memory_space<vmem>>, vector<1x64x128xbf16>
    %17 = vector.shape_cast %16 : vector<1x64x128xbf16> to vector<64x128xbf16>
    %18 = vector.extract_strided_slice %17 {offsets = [0, 0], sizes = [32, 32], strides = [1, 1]} : vector<64x128xbf16> to vector<32x32xbf16>
    %c5 = arith.constant 5 : index
    %c0_18 = arith.constant 0 : index
    %c0_19 = arith.constant 0 : index
    %19 = vector.load %arg4[%c5, %c0_18, %c0_19] : memref<7x64x128xbf16, #tpu.memory_space<vmem>>, vector<1x64x128xbf16>
    %20 = vector.shape_cast %19 : vector<1x64x128xbf16> to vector<64x128xbf16>
    %21 = vector.extract_strided_slice %20 {offsets = [0, 0], sizes = [32, 64], strides = [1, 1]} : vector<64x128xbf16> to vector<32x64xbf16>
    %c6 = arith.constant 6 : index
    %c0_20 = arith.constant 0 : index
    %c0_21 = arith.constant 0 : index
    %22 = vector.load %arg4[%c6, %c0_20, %c0_21] : memref<7x64x128xbf16, #tpu.memory_space<vmem>>, vector<1x64x128xbf16>
    %23 = vector.shape_cast %22 : vector<1x64x128xbf16> to vector<64x128xbf16>
    %24 = vector.extract_strided_slice %23 {offsets = [0, 0], sizes = [64, 32], strides = [1, 1]} : vector<64x128xbf16> to vector<64x32xbf16>
    %c0_22 = arith.constant 0 : index
    %c0_23 = arith.constant 0 : index
    %25 = vector.load %arg5[%c0_22, %c0_23] : memref<16x128xf32, #tpu.memory_space<vmem>>, vector<16x128xf32>
    %26 = vector.extract_strided_slice %25 {offsets = [0, 0], sizes = [1, 96], strides = [1, 1]} : vector<16x128xf32> to vector<1x96xf32>
    %27 = vector.extract_strided_slice %25 {offsets = [1, 0], sizes = [1, 32], strides = [1, 1]} : vector<16x128xf32> to vector<1x32xf32>
    %28 = vector.extract_strided_slice %25 {offsets = [2, 0], sizes = [1, 32], strides = [1, 1]} : vector<16x128xf32> to vector<1x32xf32>
    %29 = vector.extract_strided_slice %25 {offsets = [3, 0], sizes = [1, 64], strides = [1, 1]} : vector<16x128xf32> to vector<1x64xf32>
    %30 = vector.extract_strided_slice %25 {offsets = [4, 0], sizes = [1, 32], strides = [1, 1]} : vector<16x128xf32> to vector<1x32xf32>
    %31 = vector.extract_strided_slice %25 {offsets = [5, 0], sizes = [1, 64], strides = [1, 1]} : vector<16x128xf32> to vector<1x64xf32>
    %32 = vector.extract_strided_slice %25 {offsets = [6, 0], sizes = [1, 32], strides = [1, 1]} : vector<16x128xf32> to vector<1x32xf32>
    %33 = vector.extract_strided_slice %25 {offsets = [7, 0], sizes = [1, 32], strides = [1, 1]} : vector<16x128xf32> to vector<1x32xf32>
    %34 = vector.extract_strided_slice %25 {offsets = [8, 0], sizes = [1, 32], strides = [1, 1]} : vector<16x128xf32> to vector<1x32xf32>
    %35 = vector.extract_strided_slice %25 {offsets = [9, 0], sizes = [1, 32], strides = [1, 1]} : vector<16x128xf32> to vector<1x32xf32>
    %36 = vector.extract_strided_slice %25 {offsets = [10, 0], sizes = [1, 32], strides = [1, 1]} : vector<16x128xf32> to vector<1x32xf32>
    %37 = vector.extract_strided_slice %25 {offsets = [11, 0], sizes = [1, 32], strides = [1, 1]} : vector<16x128xf32> to vector<1x32xf32>
    %38 = vector.extract_strided_slice %25 {offsets = [12, 0], sizes = [1, 32], strides = [1, 1]} : vector<16x128xf32> to vector<1x32xf32>
    %39 = arith.addf %0, %1 : vector<16x32xf32>
    %40 = tpu.concatenate %39, %0 in 1 : vector<16x32xf32>, vector<16x32xf32> -> vector<16x64xf32>
    %41 = arith.truncf %40 : vector<16x64xf32> to vector<16x64xbf16>
    %cst = arith.constant dense<0.000000e+00> : vector<16x96xf32>
    %42 = tpu.matmul %41, %6, %cst {dimension_numbers = #tpu.dot_dimension_numbers<[1], [0], [0], [1], [0, 0, 1, 1], [], []>} : vector<16x64xbf16>, vector<64x96xbf16>, vector<16x96xf32> -> vector<16x96xf32>
    %43 = vector.broadcast %26 : vector<1x96xf32> to vector<16x96xf32>
    %44 = arith.addf %42, %43 : vector<16x96xf32>
    %45 = vector.extract_strided_slice %44 {offsets = [0, 0], sizes = [16, 32], strides = [1, 1]} : vector<16x96xf32> to vector<16x32xf32>
    %46 = vector.extract_strided_slice %44 {offsets = [0, 32], sizes = [16, 32], strides = [1, 1]} : vector<16x96xf32> to vector<16x32xf32>
    %47 = vector.extract_strided_slice %44 {offsets = [0, 64], sizes = [16, 32], strides = [1, 1]} : vector<16x96xf32> to vector<16x32xf32>
    %cst_24 = arith.constant 0.353553385 : f32
    %48 = vector.broadcast %cst_24 : f32 to vector<16x32xf32>
    %49 = arith.mulf %45, %48 : vector<16x32xf32>
    %50 = vector.shape_cast %49 : vector<16x32xf32> to vector<2x8x32xf32>
    %51 = vector.shape_cast %46 : vector<16x32xf32> to vector<2x8x32xf32>
    %52 = vector.shape_cast %47 : vector<16x32xf32> to vector<2x8x32xf32>
    %53 = vector.extract_strided_slice %50 {offsets = [0, 0, 0], sizes = [2, 8, 8], strides = [1, 1, 1]} : vector<2x8x32xf32> to vector<2x8x8xf32>
    %54 = arith.truncf %53 : vector<2x8x8xf32> to vector<2x8x8xbf16>
    %55 = vector.extract_strided_slice %51 {offsets = [0, 0, 0], sizes = [2, 8, 8], strides = [1, 1, 1]} : vector<2x8x32xf32> to vector<2x8x8xf32>
    %56 = arith.truncf %55 : vector<2x8x8xf32> to vector<2x8x8xbf16>
    %57 = vector.extract_strided_slice %52 {offsets = [0, 0, 0], sizes = [2, 8, 8], strides = [1, 1, 1]} : vector<2x8x32xf32> to vector<2x8x8xf32>
    %58 = arith.truncf %57 : vector<2x8x8xf32> to vector<2x8x8xbf16>
    "tpu.trace_start"() <{level = 10 : i32, message = "bqd,bkd->bqk"}> : () -> ()
    %cst_25 = arith.constant dense<0.000000e+00> : vector<2x8x8xf32>
    %59 = tpu.matmul %54, %56, %cst_25 {dimension_numbers = #tpu.dot_dimension_numbers<[2], [2], [1], [1], [0, 0, 0, 1, 1, 1], [0], [0]>} : vector<2x8x8xbf16>, vector<2x8x8xbf16>, vector<2x8x8xf32> -> vector<2x8x8xf32>
    "tpu.trace_stop"() : () -> ()
    %cst_26 = arith.constant dense<0xFF800000> : vector<2x8xf32>
    %60 = vector.multi_reduction <maximumf>, %59, %cst_26 [2] : vector<2x8x8xf32> to vector<2x8xf32>
    %61 = vector.shape_cast %60 : vector<2x8xf32> to vector<2x8x1xf32>
    %62 = vector.broadcast %61 : vector<2x8x1xf32> to vector<2x8x8xf32>
    %63 = arith.subf %59, %62 : vector<2x8x8xf32>
    %64 = math.exp %63 : vector<2x8x8xf32>
    %cst_27 = arith.constant dense<0.000000e+00> : vector<2x8xf32>
    %65 = vector.multi_reduction <add>, %64, %cst_27 [2] : vector<2x8x8xf32> to vector<2x8xf32>
    %66 = vector.shape_cast %65 : vector<2x8xf32> to vector<2x8x1xf32>
    %67 = tpu.reciprocal %66 {approx = true} : vector<2x8x1xf32> -> vector<2x8x1xf32>
    %68 = vector.broadcast %67 : vector<2x8x1xf32> to vector<2x8x8xf32>
    %69 = arith.mulf %64, %68 : vector<2x8x8xf32>
    %70 = arith.truncf %69 : vector<2x8x8xf32> to vector<2x8x8xbf16>
    "tpu.trace_start"() <{level = 10 : i32, message = "bqk,bkd->bqd"}> : () -> ()
    %cst_28 = arith.constant dense<0.000000e+00> : vector<2x8x8xf32>
    %71 = tpu.matmul %70, %58, %cst_28 {dimension_numbers = #tpu.dot_dimension_numbers<[2], [1], [1], [2], [0, 0, 0, 1, 1, 2], [0], [0]>} : vector<2x8x8xbf16>, vector<2x8x8xbf16>, vector<2x8x8xf32> -> vector<2x8x8xf32>
    "tpu.trace_stop"() : () -> ()
    %72 = vector.extract_strided_slice %50 {offsets = [0, 0, 8], sizes = [2, 8, 8], strides = [1, 1, 1]} : vector<2x8x32xf32> to vector<2x8x8xf32>
    %73 = arith.truncf %72 : vector<2x8x8xf32> to vector<2x8x8xbf16>
    %74 = vector.extract_strided_slice %51 {offsets = [0, 0, 8], sizes = [2, 8, 8], strides = [1, 1, 1]} : vector<2x8x32xf32> to vector<2x8x8xf32>
    %75 = arith.truncf %74 : vector<2x8x8xf32> to vector<2x8x8xbf16>
    %76 = vector.extract_strided_slice %52 {offsets = [0, 0, 8], sizes = [2, 8, 8], strides = [1, 1, 1]} : vector<2x8x32xf32> to vector<2x8x8xf32>
    %77 = arith.truncf %76 : vector<2x8x8xf32> to vector<2x8x8xbf16>
    "tpu.trace_start"() <{level = 10 : i32, message = "bqd,bkd->bqk"}> : () -> ()
    %cst_29 = arith.constant dense<0.000000e+00> : vector<2x8x8xf32>
    %78 = tpu.matmul %73, %75, %cst_29 {dimension_numbers = #tpu.dot_dimension_numbers<[2], [2], [1], [1], [0, 0, 0, 1, 1, 1], [0], [0]>} : vector<2x8x8xbf16>, vector<2x8x8xbf16>, vector<2x8x8xf32> -> vector<2x8x8xf32>
    "tpu.trace_stop"() : () -> ()
    %cst_30 = arith.constant dense<0xFF800000> : vector<2x8xf32>
    %79 = vector.multi_reduction <maximumf>, %78, %cst_30 [2] : vector<2x8x8xf32> to vector<2x8xf32>
    %80 = vector.shape_cast %79 : vector<2x8xf32> to vector<2x8x1xf32>
    %81 = vector.broadcast %80 : vector<2x8x1xf32> to vector<2x8x8xf32>
    %82 = arith.subf %78, %81 : vector<2x8x8xf32>
    %83 = math.exp %82 : vector<2x8x8xf32>
    %cst_31 = arith.constant dense<0.000000e+00> : vector<2x8xf32>
    %84 = vector.multi_reduction <add>, %83, %cst_31 [2] : vector<2x8x8xf32> to vector<2x8xf32>
    %85 = vector.shape_cast %84 : vector<2x8xf32> to vector<2x8x1xf32>
    %86 = tpu.reciprocal %85 {approx = true} : vector<2x8x1xf32> -> vector<2x8x1xf32>
    %87 = vector.broadcast %86 : vector<2x8x1xf32> to vector<2x8x8xf32>
    %88 = arith.mulf %83, %87 : vector<2x8x8xf32>
    %89 = arith.truncf %88 : vector<2x8x8xf32> to vector<2x8x8xbf16>
    "tpu.trace_start"() <{level = 10 : i32, message = "bqk,bkd->bqd"}> : () -> ()
    %cst_32 = arith.constant dense<0.000000e+00> : vector<2x8x8xf32>
    %90 = tpu.matmul %89, %77, %cst_32 {dimension_numbers = #tpu.dot_dimension_numbers<[2], [1], [1], [2], [0, 0, 0, 1, 1, 2], [0], [0]>} : vector<2x8x8xbf16>, vector<2x8x8xbf16>, vector<2x8x8xf32> -> vector<2x8x8xf32>
    "tpu.trace_stop"() : () -> ()
    %91 = vector.extract_strided_slice %50 {offsets = [0, 0, 16], sizes = [2, 8, 8], strides = [1, 1, 1]} : vector<2x8x32xf32> to vector<2x8x8xf32>
    %92 = arith.truncf %91 : vector<2x8x8xf32> to vector<2x8x8xbf16>
    %93 = vector.extract_strided_slice %51 {offsets = [0, 0, 16], sizes = [2, 8, 8], strides = [1, 1, 1]} : vector<2x8x32xf32> to vector<2x8x8xf32>
    %94 = arith.truncf %93 : vector<2x8x8xf32> to vector<2x8x8xbf16>
    %95 = vector.extract_strided_slice %52 {offsets = [0, 0, 16], sizes = [2, 8, 8], strides = [1, 1, 1]} : vector<2x8x32xf32> to vector<2x8x8xf32>
    %96 = arith.truncf %95 : vector<2x8x8xf32> to vector<2x8x8xbf16>
    "tpu.trace_start"() <{level = 10 : i32, message = "bqd,bkd->bqk"}> : () -> ()
    %cst_33 = arith.constant dense<0.000000e+00> : vector<2x8x8xf32>
    %97 = tpu.matmul %92, %94, %cst_33 {dimension_numbers = #tpu.dot_dimension_numbers<[2], [2], [1], [1], [0, 0, 0, 1, 1, 1], [0], [0]>} : vector<2x8x8xbf16>, vector<2x8x8xbf16>, vector<2x8x8xf32> -> vector<2x8x8xf32>
    "tpu.trace_stop"() : () -> ()
    %cst_34 = arith.constant dense<0xFF800000> : vector<2x8xf32>
    %98 = vector.multi_reduction <maximumf>, %97, %cst_34 [2] : vector<2x8x8xf32> to vector<2x8xf32>
    %99 = vector.shape_cast %98 : vector<2x8xf32> to vector<2x8x1xf32>
    %100 = vector.broadcast %99 : vector<2x8x1xf32> to vector<2x8x8xf32>
    %101 = arith.subf %97, %100 : vector<2x8x8xf32>
    %102 = math.exp %101 : vector<2x8x8xf32>
    %cst_35 = arith.constant dense<0.000000e+00> : vector<2x8xf32>
    %103 = vector.multi_reduction <add>, %102, %cst_35 [2] : vector<2x8x8xf32> to vector<2x8xf32>
    %104 = vector.shape_cast %103 : vector<2x8xf32> to vector<2x8x1xf32>
    %105 = tpu.reciprocal %104 {approx = true} : vector<2x8x1xf32> -> vector<2x8x1xf32>
    %106 = vector.broadcast %105 : vector<2x8x1xf32> to vector<2x8x8xf32>
    %107 = arith.mulf %102, %106 : vector<2x8x8xf32>
    %108 = arith.truncf %107 : vector<2x8x8xf32> to vector<2x8x8xbf16>
    "tpu.trace_start"() <{level = 10 : i32, message = "bqk,bkd->bqd"}> : () -> ()
    %cst_36 = arith.constant dense<0.000000e+00> : vector<2x8x8xf32>
    %109 = tpu.matmul %108, %96, %cst_36 {dimension_numbers = #tpu.dot_dimension_numbers<[2], [1], [1], [2], [0, 0, 0, 1, 1, 2], [0], [0]>} : vector<2x8x8xbf16>, vector<2x8x8xbf16>, vector<2x8x8xf32> -> vector<2x8x8xf32>
    "tpu.trace_stop"() : () -> ()
    %110 = vector.extract_strided_slice %50 {offsets = [0, 0, 24], sizes = [2, 8, 8], strides = [1, 1, 1]} : vector<2x8x32xf32> to vector<2x8x8xf32>
    %111 = arith.truncf %110 : vector<2x8x8xf32> to vector<2x8x8xbf16>
    %112 = vector.extract_strided_slice %51 {offsets = [0, 0, 24], sizes = [2, 8, 8], strides = [1, 1, 1]} : vector<2x8x32xf32> to vector<2x8x8xf32>
    %113 = arith.truncf %112 : vector<2x8x8xf32> to vector<2x8x8xbf16>
    %114 = vector.extract_strided_slice %52 {offsets = [0, 0, 24], sizes = [2, 8, 8], strides = [1, 1, 1]} : vector<2x8x32xf32> to vector<2x8x8xf32>
    %115 = arith.truncf %114 : vector<2x8x8xf32> to vector<2x8x8xbf16>
    "tpu.trace_start"() <{level = 10 : i32, message = "bqd,bkd->bqk"}> : () -> ()
    %cst_37 = arith.constant dense<0.000000e+00> : vector<2x8x8xf32>
    %116 = tpu.matmul %111, %113, %cst_37 {dimension_numbers = #tpu.dot_dimension_numbers<[2], [2], [1], [1], [0, 0, 0, 1, 1, 1], [0], [0]>} : vector<2x8x8xbf16>, vector<2x8x8xbf16>, vector<2x8x8xf32> -> vector<2x8x8xf32>
    "tpu.trace_stop"() : () -> ()
    %cst_38 = arith.constant dense<0xFF800000> : vector<2x8xf32>
    %117 = vector.multi_reduction <maximumf>, %116, %cst_38 [2] : vector<2x8x8xf32> to vector<2x8xf32>
    %118 = vector.shape_cast %117 : vector<2x8xf32> to vector<2x8x1xf32>
    %119 = vector.broadcast %118 : vector<2x8x1xf32> to vector<2x8x8xf32>
    %120 = arith.subf %116, %119 : vector<2x8x8xf32>
    %121 = math.exp %120 : vector<2x8x8xf32>
    %cst_39 = arith.constant dense<0.000000e+00> : vector<2x8xf32>
    %122 = vector.multi_reduction <add>, %121, %cst_39 [2] : vector<2x8x8xf32> to vector<2x8xf32>
    %123 = vector.shape_cast %122 : vector<2x8xf32> to vector<2x8x1xf32>
    %124 = tpu.reciprocal %123 {approx = true} : vector<2x8x1xf32> -> vector<2x8x1xf32>
    %125 = vector.broadcast %124 : vector<2x8x1xf32> to vector<2x8x8xf32>
    %126 = arith.mulf %121, %125 : vector<2x8x8xf32>
    %127 = arith.truncf %126 : vector<2x8x8xf32> to vector<2x8x8xbf16>
    "tpu.trace_start"() <{level = 10 : i32, message = "bqk,bkd->bqd"}> : () -> ()
    %cst_40 = arith.constant dense<0.000000e+00> : vector<2x8x8xf32>
    %128 = tpu.matmul %127, %115, %cst_40 {dimension_numbers = #tpu.dot_dimension_numbers<[2], [1], [1], [2], [0, 0, 0, 1, 1, 2], [0], [0]>} : vector<2x8x8xbf16>, vector<2x8x8xbf16>, vector<2x8x8xf32> -> vector<2x8x8xf32>
    "tpu.trace_stop"() : () -> ()
    %129 = tpu.concatenate %71, %90, %109, %128 in 2 : vector<2x8x8xf32>, vector<2x8x8xf32>, vector<2x8x8xf32>, vector<2x8x8xf32> -> vector<2x8x32xf32>
    %130 = vector.shape_cast %129 : vector<2x8x32xf32> to vector<16x32xf32>
    %131 = arith.truncf %130 : vector<16x32xf32> to vector<16x32xbf16>
    %cst_41 = arith.constant dense<0.000000e+00> : vector<16x32xf32>
    %132 = tpu.matmul %131, %9, %cst_41 {dimension_numbers = #tpu.dot_dimension_numbers<[1], [0], [0], [1], [0, 0, 1, 1], [], []>} : vector<16x32xbf16>, vector<32x32xbf16>, vector<16x32xf32> -> vector<16x32xf32>
    %133 = vector.broadcast %27 : vector<1x32xf32> to vector<16x32xf32>
    %134 = arith.addf %132, %133 : vector<16x32xf32>
    %135 = arith.addf %0, %134 : vector<16x32xf32>
    %cst_42 = arith.constant dense<0.000000e+00> : vector<16xf32>
    %136 = vector.multi_reduction <add>, %135, %cst_42 [1] : vector<16x32xf32> to vector<16xf32>
    %137 = vector.shape_cast %136 : vector<16xf32> to vector<16x1xf32>
    %cst_43 = arith.constant 3.200000e+01 : f32
    %138 = vector.broadcast %cst_43 : f32 to vector<16x1xf32>
    %139 = arith.divf %137, %138 : vector<16x1xf32>
    %140 = vector.broadcast %139 : vector<16x1xf32> to vector<16x32xf32>
    %141 = arith.subf %135, %140 : vector<16x32xf32>
    %142 = arith.mulf %141, %141 : vector<16x32xf32>
    %cst_44 = arith.constant dense<0.000000e+00> : vector<16xf32>
    %143 = vector.multi_reduction <add>, %142, %cst_44 [1] : vector<16x32xf32> to vector<16xf32>
    %144 = vector.shape_cast %143 : vector<16xf32> to vector<16x1xf32>
    %cst_45 = arith.constant 3.200000e+01 : f32
    %145 = vector.broadcast %cst_45 : f32 to vector<16x1xf32>
    %146 = arith.divf %144, %145 : vector<16x1xf32>
    %147 = vector.broadcast %139 : vector<16x1xf32> to vector<16x32xf32>
    %148 = arith.subf %135, %147 : vector<16x32xf32>
    %cst_46 = arith.constant 9.99999974E-6 : f32
    %149 = vector.broadcast %cst_46 : f32 to vector<16x1xf32>
    %150 = arith.addf %146, %149 : vector<16x1xf32>
    %151 = math.rsqrt %150 : vector<16x1xf32>
    %152 = vector.broadcast %151 : vector<16x1xf32> to vector<16x32xf32>
    %153 = arith.mulf %148, %152 : vector<16x32xf32>
    %154 = vector.broadcast %33 : vector<1x32xf32> to vector<16x32xf32>
    %155 = arith.mulf %153, %154 : vector<16x32xf32>
    %156 = vector.broadcast %34 : vector<1x32xf32> to vector<16x32xf32>
    %157 = arith.addf %155, %156 : vector<16x32xf32>
    %158 = arith.addf %157, %1 : vector<16x32xf32>
    %159 = arith.truncf %158 : vector<16x32xf32> to vector<16x32xbf16>
    %cst_47 = arith.constant dense<0.000000e+00> : vector<16x32xf32>
    %160 = tpu.matmul %159, %12, %cst_47 {dimension_numbers = #tpu.dot_dimension_numbers<[1], [0], [0], [1], [0, 0, 1, 1], [], []>} : vector<16x32xbf16>, vector<32x32xbf16>, vector<16x32xf32> -> vector<16x32xf32>
    %161 = vector.broadcast %28 : vector<1x32xf32> to vector<16x32xf32>
    %162 = arith.addf %160, %161 : vector<16x32xf32>
    %163 = arith.addf %2, %3 : vector<32x32xf32>
    %164 = tpu.concatenate %163, %2 in 1 : vector<32x32xf32>, vector<32x32xf32> -> vector<32x64xf32>
    %165 = arith.truncf %164 : vector<32x64xf32> to vector<32x64xbf16>
    %cst_48 = arith.constant dense<0.000000e+00> : vector<32x64xf32>
    %166 = tpu.matmul %165, %15, %cst_48 {dimension_numbers = #tpu.dot_dimension_numbers<[1], [0], [0], [1], [0, 0, 1, 1], [], []>} : vector<32x64xbf16>, vector<64x64xbf16>, vector<32x64xf32> -> vector<32x64xf32>
    %167 = vector.broadcast %29 : vector<1x64xf32> to vector<32x64xf32>
    %168 = arith.addf %166, %167 : vector<32x64xf32>
    %169 = vector.extract_strided_slice %168 {offsets = [0, 0], sizes = [32, 32], strides = [1, 1]} : vector<32x64xf32> to vector<32x32xf32>
    %170 = vector.extract_strided_slice %168 {offsets = [0, 32], sizes = [32, 32], strides = [1, 1]} : vector<32x64xf32> to vector<32x32xf32>
    %cst_49 = arith.constant 0.353553385 : f32
    %171 = vector.broadcast %cst_49 : f32 to vector<16x32xf32>
    %172 = arith.mulf %162, %171 : vector<16x32xf32>
    %173 = vector.shape_cast %172 : vector<16x32xf32> to vector<2x8x32xf32>
    %174 = vector.shape_cast %169 : vector<32x32xf32> to vector<2x16x32xf32>
    %175 = vector.shape_cast %170 : vector<32x32xf32> to vector<2x16x32xf32>
    %176 = vector.extract_strided_slice %173 {offsets = [0, 0, 0], sizes = [2, 8, 8], strides = [1, 1, 1]} : vector<2x8x32xf32> to vector<2x8x8xf32>
    %177 = arith.truncf %176 : vector<2x8x8xf32> to vector<2x8x8xbf16>
    %178 = vector.extract_strided_slice %174 {offsets = [0, 0, 0], sizes = [2, 16, 8], strides = [1, 1, 1]} : vector<2x16x32xf32> to vector<2x16x8xf32>
    %179 = arith.truncf %178 : vector<2x16x8xf32> to vector<2x16x8xbf16>
    %180 = vector.extract_strided_slice %175 {offsets = [0, 0, 0], sizes = [2, 16, 8], strides = [1, 1, 1]} : vector<2x16x32xf32> to vector<2x16x8xf32>
    %181 = arith.truncf %180 : vector<2x16x8xf32> to vector<2x16x8xbf16>
    "tpu.trace_start"() <{level = 10 : i32, message = "bqd,bkd->bqk"}> : () -> ()
    %cst_50 = arith.constant dense<0.000000e+00> : vector<2x8x16xf32>
    %182 = tpu.matmul %177, %179, %cst_50 {dimension_numbers = #tpu.dot_dimension_numbers<[2], [2], [1], [1], [0, 0, 0, 1, 1, 1], [0], [0]>} : vector<2x8x8xbf16>, vector<2x16x8xbf16>, vector<2x8x16xf32> -> vector<2x8x16xf32>
    "tpu.trace_stop"() : () -> ()
    %cst_51 = arith.constant dense<0xFF800000> : vector<2x8xf32>
    %183 = vector.multi_reduction <maximumf>, %182, %cst_51 [2] : vector<2x8x16xf32> to vector<2x8xf32>
    %184 = vector.shape_cast %183 : vector<2x8xf32> to vector<2x8x1xf32>
    %185 = vector.broadcast %184 : vector<2x8x1xf32> to vector<2x8x16xf32>
    %186 = arith.subf %182, %185 : vector<2x8x16xf32>
    %187 = math.exp %186 : vector<2x8x16xf32>
    %cst_52 = arith.constant dense<0.000000e+00> : vector<2x8xf32>
    %188 = vector.multi_reduction <add>, %187, %cst_52 [2] : vector<2x8x16xf32> to vector<2x8xf32>
    %189 = vector.shape_cast %188 : vector<2x8xf32> to vector<2x8x1xf32>
    %190 = tpu.reciprocal %189 {approx = true} : vector<2x8x1xf32> -> vector<2x8x1xf32>
    %191 = vector.broadcast %190 : vector<2x8x1xf32> to vector<2x8x16xf32>
    %192 = arith.mulf %187, %191 : vector<2x8x16xf32>
    %193 = arith.truncf %192 : vector<2x8x16xf32> to vector<2x8x16xbf16>
    "tpu.trace_start"() <{level = 10 : i32, message = "bqk,bkd->bqd"}> : () -> ()
    %cst_53 = arith.constant dense<0.000000e+00> : vector<2x8x8xf32>
    %194 = tpu.matmul %193, %181, %cst_53 {dimension_numbers = #tpu.dot_dimension_numbers<[2], [1], [1], [2], [0, 0, 0, 1, 1, 2], [0], [0]>} : vector<2x8x16xbf16>, vector<2x16x8xbf16>, vector<2x8x8xf32> -> vector<2x8x8xf32>
    "tpu.trace_stop"() : () -> ()
    %195 = vector.extract_strided_slice %173 {offsets = [0, 0, 8], sizes = [2, 8, 8], strides = [1, 1, 1]} : vector<2x8x32xf32> to vector<2x8x8xf32>
    %196 = arith.truncf %195 : vector<2x8x8xf32> to vector<2x8x8xbf16>
    %197 = vector.extract_strided_slice %174 {offsets = [0, 0, 8], sizes = [2, 16, 8], strides = [1, 1, 1]} : vector<2x16x32xf32> to vector<2x16x8xf32>
    %198 = arith.truncf %197 : vector<2x16x8xf32> to vector<2x16x8xbf16>
    %199 = vector.extract_strided_slice %175 {offsets = [0, 0, 8], sizes = [2, 16, 8], strides = [1, 1, 1]} : vector<2x16x32xf32> to vector<2x16x8xf32>
    %200 = arith.truncf %199 : vector<2x16x8xf32> to vector<2x16x8xbf16>
    "tpu.trace_start"() <{level = 10 : i32, message = "bqd,bkd->bqk"}> : () -> ()
    %cst_54 = arith.constant dense<0.000000e+00> : vector<2x8x16xf32>
    %201 = tpu.matmul %196, %198, %cst_54 {dimension_numbers = #tpu.dot_dimension_numbers<[2], [2], [1], [1], [0, 0, 0, 1, 1, 1], [0], [0]>} : vector<2x8x8xbf16>, vector<2x16x8xbf16>, vector<2x8x16xf32> -> vector<2x8x16xf32>
    "tpu.trace_stop"() : () -> ()
    %cst_55 = arith.constant dense<0xFF800000> : vector<2x8xf32>
    %202 = vector.multi_reduction <maximumf>, %201, %cst_55 [2] : vector<2x8x16xf32> to vector<2x8xf32>
    %203 = vector.shape_cast %202 : vector<2x8xf32> to vector<2x8x1xf32>
    %204 = vector.broadcast %203 : vector<2x8x1xf32> to vector<2x8x16xf32>
    %205 = arith.subf %201, %204 : vector<2x8x16xf32>
    %206 = math.exp %205 : vector<2x8x16xf32>
    %cst_56 = arith.constant dense<0.000000e+00> : vector<2x8xf32>
    %207 = vector.multi_reduction <add>, %206, %cst_56 [2] : vector<2x8x16xf32> to vector<2x8xf32>
    %208 = vector.shape_cast %207 : vector<2x8xf32> to vector<2x8x1xf32>
    %209 = tpu.reciprocal %208 {approx = true} : vector<2x8x1xf32> -> vector<2x8x1xf32>
    %210 = vector.broadcast %209 : vector<2x8x1xf32> to vector<2x8x16xf32>
    %211 = arith.mulf %206, %210 : vector<2x8x16xf32>
    %212 = arith.truncf %211 : vector<2x8x16xf32> to vector<2x8x16xbf16>
    "tpu.trace_start"() <{level = 10 : i32, message = "bqk,bkd->bqd"}> : () -> ()
    %cst_57 = arith.constant dense<0.000000e+00> : vector<2x8x8xf32>
    %213 = tpu.matmul %212, %200, %cst_57 {dimension_numbers = #tpu.dot_dimension_numbers<[2], [1], [1], [2], [0, 0, 0, 1, 1, 2], [0], [0]>} : vector<2x8x16xbf16>, vector<2x16x8xbf16>, vector<2x8x8xf32> -> vector<2x8x8xf32>
    "tpu.trace_stop"() : () -> ()
    %214 = vector.extract_strided_slice %173 {offsets = [0, 0, 16], sizes = [2, 8, 8], strides = [1, 1, 1]} : vector<2x8x32xf32> to vector<2x8x8xf32>
    %215 = arith.truncf %214 : vector<2x8x8xf32> to vector<2x8x8xbf16>
    %216 = vector.extract_strided_slice %174 {offsets = [0, 0, 16], sizes = [2, 16, 8], strides = [1, 1, 1]} : vector<2x16x32xf32> to vector<2x16x8xf32>
    %217 = arith.truncf %216 : vector<2x16x8xf32> to vector<2x16x8xbf16>
    %218 = vector.extract_strided_slice %175 {offsets = [0, 0, 16], sizes = [2, 16, 8], strides = [1, 1, 1]} : vector<2x16x32xf32> to vector<2x16x8xf32>
    %219 = arith.truncf %218 : vector<2x16x8xf32> to vector<2x16x8xbf16>
    "tpu.trace_start"() <{level = 10 : i32, message = "bqd,bkd->bqk"}> : () -> ()
    %cst_58 = arith.constant dense<0.000000e+00> : vector<2x8x16xf32>
    %220 = tpu.matmul %215, %217, %cst_58 {dimension_numbers = #tpu.dot_dimension_numbers<[2], [2], [1], [1], [0, 0, 0, 1, 1, 1], [0], [0]>} : vector<2x8x8xbf16>, vector<2x16x8xbf16>, vector<2x8x16xf32> -> vector<2x8x16xf32>
    "tpu.trace_stop"() : () -> ()
    %cst_59 = arith.constant dense<0xFF800000> : vector<2x8xf32>
    %221 = vector.multi_reduction <maximumf>, %220, %cst_59 [2] : vector<2x8x16xf32> to vector<2x8xf32>
    %222 = vector.shape_cast %221 : vector<2x8xf32> to vector<2x8x1xf32>
    %223 = vector.broadcast %222 : vector<2x8x1xf32> to vector<2x8x16xf32>
    %224 = arith.subf %220, %223 : vector<2x8x16xf32>
    %225 = math.exp %224 : vector<2x8x16xf32>
    %cst_60 = arith.constant dense<0.000000e+00> : vector<2x8xf32>
    %226 = vector.multi_reduction <add>, %225, %cst_60 [2] : vector<2x8x16xf32> to vector<2x8xf32>
    %227 = vector.shape_cast %226 : vector<2x8xf32> to vector<2x8x1xf32>
    %228 = tpu.reciprocal %227 {approx = true} : vector<2x8x1xf32> -> vector<2x8x1xf32>
    %229 = vector.broadcast %228 : vector<2x8x1xf32> to vector<2x8x16xf32>
    %230 = arith.mulf %225, %229 : vector<2x8x16xf32>
    %231 = arith.truncf %230 : vector<2x8x16xf32> to vector<2x8x16xbf16>
    "tpu.trace_start"() <{level = 10 : i32, message = "bqk,bkd->bqd"}> : () -> ()
    %cst_61 = arith.constant dense<0.000000e+00> : vector<2x8x8xf32>
    %232 = tpu.matmul %231, %219, %cst_61 {dimension_numbers = #tpu.dot_dimension_numbers<[2], [1], [1], [2], [0, 0, 0, 1, 1, 2], [0], [0]>} : vector<2x8x16xbf16>, vector<2x16x8xbf16>, vector<2x8x8xf32> -> vector<2x8x8xf32>
    "tpu.trace_stop"() : () -> ()
    %233 = vector.extract_strided_slice %173 {offsets = [0, 0, 24], sizes = [2, 8, 8], strides = [1, 1, 1]} : vector<2x8x32xf32> to vector<2x8x8xf32>
    %234 = arith.truncf %233 : vector<2x8x8xf32> to vector<2x8x8xbf16>
    %235 = vector.extract_strided_slice %174 {offsets = [0, 0, 24], sizes = [2, 16, 8], strides = [1, 1, 1]} : vector<2x16x32xf32> to vector<2x16x8xf32>
    %236 = arith.truncf %235 : vector<2x16x8xf32> to vector<2x16x8xbf16>
    %237 = vector.extract_strided_slice %175 {offsets = [0, 0, 24], sizes = [2, 16, 8], strides = [1, 1, 1]} : vector<2x16x32xf32> to vector<2x16x8xf32>
    %238 = arith.truncf %237 : vector<2x16x8xf32> to vector<2x16x8xbf16>
    "tpu.trace_start"() <{level = 10 : i32, message = "bqd,bkd->bqk"}> : () -> ()
    %cst_62 = arith.constant dense<0.000000e+00> : vector<2x8x16xf32>
    %239 = tpu.matmul %234, %236, %cst_62 {dimension_numbers = #tpu.dot_dimension_numbers<[2], [2], [1], [1], [0, 0, 0, 1, 1, 1], [0], [0]>} : vector<2x8x8xbf16>, vector<2x16x8xbf16>, vector<2x8x16xf32> -> vector<2x8x16xf32>
    "tpu.trace_stop"() : () -> ()
    %cst_63 = arith.constant dense<0xFF800000> : vector<2x8xf32>
    %240 = vector.multi_reduction <maximumf>, %239, %cst_63 [2] : vector<2x8x16xf32> to vector<2x8xf32>
    %241 = vector.shape_cast %240 : vector<2x8xf32> to vector<2x8x1xf32>
    %242 = vector.broadcast %241 : vector<2x8x1xf32> to vector<2x8x16xf32>
    %243 = arith.subf %239, %242 : vector<2x8x16xf32>
    %244 = math.exp %243 : vector<2x8x16xf32>
    %cst_64 = arith.constant dense<0.000000e+00> : vector<2x8xf32>
    %245 = vector.multi_reduction <add>, %244, %cst_64 [2] : vector<2x8x16xf32> to vector<2x8xf32>
    %246 = vector.shape_cast %245 : vector<2x8xf32> to vector<2x8x1xf32>
    %247 = tpu.reciprocal %246 {approx = true} : vector<2x8x1xf32> -> vector<2x8x1xf32>
    %248 = vector.broadcast %247 : vector<2x8x1xf32> to vector<2x8x16xf32>
    %249 = arith.mulf %244, %248 : vector<2x8x16xf32>
    %250 = arith.truncf %249 : vector<2x8x16xf32> to vector<2x8x16xbf16>
    "tpu.trace_start"() <{level = 10 : i32, message = "bqk,bkd->bqd"}> : () -> ()
    %cst_65 = arith.constant dense<0.000000e+00> : vector<2x8x8xf32>
    %251 = tpu.matmul %250, %238, %cst_65 {dimension_numbers = #tpu.dot_dimension_numbers<[2], [1], [1], [2], [0, 0, 0, 1, 1, 2], [0], [0]>} : vector<2x8x16xbf16>, vector<2x16x8xbf16>, vector<2x8x8xf32> -> vector<2x8x8xf32>
    "tpu.trace_stop"() : () -> ()
    %252 = tpu.concatenate %194, %213, %232, %251 in 2 : vector<2x8x8xf32>, vector<2x8x8xf32>, vector<2x8x8xf32>, vector<2x8x8xf32> -> vector<2x8x32xf32>
    %253 = vector.shape_cast %252 : vector<2x8x32xf32> to vector<16x32xf32>
    %254 = arith.truncf %253 : vector<16x32xf32> to vector<16x32xbf16>
    %cst_66 = arith.constant dense<0.000000e+00> : vector<16x32xf32>
    %255 = tpu.matmul %254, %18, %cst_66 {dimension_numbers = #tpu.dot_dimension_numbers<[1], [0], [0], [1], [0, 0, 1, 1], [], []>} : vector<16x32xbf16>, vector<32x32xbf16>, vector<16x32xf32> -> vector<16x32xf32>
    %256 = vector.broadcast %30 : vector<1x32xf32> to vector<16x32xf32>
    %257 = arith.addf %255, %256 : vector<16x32xf32>
    %258 = arith.addf %157, %257 : vector<16x32xf32>
    %cst_67 = arith.constant dense<0.000000e+00> : vector<16xf32>
    %259 = vector.multi_reduction <add>, %258, %cst_67 [1] : vector<16x32xf32> to vector<16xf32>
    %260 = vector.shape_cast %259 : vector<16xf32> to vector<16x1xf32>
    %cst_68 = arith.constant 3.200000e+01 : f32
    %261 = vector.broadcast %cst_68 : f32 to vector<16x1xf32>
    %262 = arith.divf %260, %261 : vector<16x1xf32>
    %263 = vector.broadcast %262 : vector<16x1xf32> to vector<16x32xf32>
    %264 = arith.subf %258, %263 : vector<16x32xf32>
    %265 = arith.mulf %264, %264 : vector<16x32xf32>
    %cst_69 = arith.constant dense<0.000000e+00> : vector<16xf32>
    %266 = vector.multi_reduction <add>, %265, %cst_69 [1] : vector<16x32xf32> to vector<16xf32>
    %267 = vector.shape_cast %266 : vector<16xf32> to vector<16x1xf32>
    %cst_70 = arith.constant 3.200000e+01 : f32
    %268 = vector.broadcast %cst_70 : f32 to vector<16x1xf32>
    %269 = arith.divf %267, %268 : vector<16x1xf32>
    %270 = vector.broadcast %262 : vector<16x1xf32> to vector<16x32xf32>
    %271 = arith.subf %258, %270 : vector<16x32xf32>
    %cst_71 = arith.constant 9.99999974E-6 : f32
    %272 = vector.broadcast %cst_71 : f32 to vector<16x1xf32>
    %273 = arith.addf %269, %272 : vector<16x1xf32>
    %274 = math.rsqrt %273 : vector<16x1xf32>
    %275 = vector.broadcast %274 : vector<16x1xf32> to vector<16x32xf32>
    %276 = arith.mulf %271, %275 : vector<16x32xf32>
    %277 = vector.broadcast %35 : vector<1x32xf32> to vector<16x32xf32>
    %278 = arith.mulf %276, %277 : vector<16x32xf32>
    %279 = vector.broadcast %36 : vector<1x32xf32> to vector<16x32xf32>
    %280 = arith.addf %278, %279 : vector<16x32xf32>
    %281 = arith.truncf %280 : vector<16x32xf32> to vector<16x32xbf16>
    %cst_72 = arith.constant dense<0.000000e+00> : vector<16x64xf32>
    %282 = tpu.matmul %281, %21, %cst_72 {dimension_numbers = #tpu.dot_dimension_numbers<[1], [0], [0], [1], [0, 0, 1, 1], [], []>} : vector<16x32xbf16>, vector<32x64xbf16>, vector<16x64xf32> -> vector<16x64xf32>
    %283 = vector.broadcast %31 : vector<1x64xf32> to vector<16x64xf32>
    %284 = arith.addf %282, %283 : vector<16x64xf32>
    %cst_73 = arith.constant 0.000000e+00 : f32
    %285 = vector.broadcast %cst_73 : f32 to vector<16x64xf32>
    %286 = arith.maximumf %284, %285 : vector<16x64xf32>
    %287 = arith.truncf %286 : vector<16x64xf32> to vector<16x64xbf16>
    %cst_74 = arith.constant dense<0.000000e+00> : vector<16x32xf32>
    %288 = tpu.matmul %287, %24, %cst_74 {dimension_numbers = #tpu.dot_dimension_numbers<[1], [0], [0], [1], [0, 0, 1, 1], [], []>} : vector<16x64xbf16>, vector<64x32xbf16>, vector<16x32xf32> -> vector<16x32xf32>
    %289 = vector.broadcast %32 : vector<1x32xf32> to vector<16x32xf32>
    %290 = arith.addf %288, %289 : vector<16x32xf32>
    %291 = arith.addf %280, %290 : vector<16x32xf32>
    %cst_75 = arith.constant dense<0.000000e+00> : vector<16xf32>
    %292 = vector.multi_reduction <add>, %291, %cst_75 [1] : vector<16x32xf32> to vector<16xf32>
    %293 = vector.shape_cast %292 : vector<16xf32> to vector<16x1xf32>
    %cst_76 = arith.constant 3.200000e+01 : f32
    %294 = vector.broadcast %cst_76 : f32 to vector<16x1xf32>
    %295 = arith.divf %293, %294 : vector<16x1xf32>
    %296 = vector.broadcast %295 : vector<16x1xf32> to vector<16x32xf32>
    %297 = arith.subf %291, %296 : vector<16x32xf32>
    %298 = arith.mulf %297, %297 : vector<16x32xf32>
    %cst_77 = arith.constant dense<0.000000e+00> : vector<16xf32>
    %299 = vector.multi_reduction <add>, %298, %cst_77 [1] : vector<16x32xf32> to vector<16xf32>
    %300 = vector.shape_cast %299 : vector<16xf32> to vector<16x1xf32>
    %cst_78 = arith.constant 3.200000e+01 : f32
    %301 = vector.broadcast %cst_78 : f32 to vector<16x1xf32>
    %302 = arith.divf %300, %301 : vector<16x1xf32>
    %303 = vector.broadcast %295 : vector<16x1xf32> to vector<16x32xf32>
    %304 = arith.subf %291, %303 : vector<16x32xf32>
    %cst_79 = arith.constant 9.99999974E-6 : f32
    %305 = vector.broadcast %cst_79 : f32 to vector<16x1xf32>
    %306 = arith.addf %302, %305 : vector<16x1xf32>
    %307 = math.rsqrt %306 : vector<16x1xf32>
    %308 = vector.broadcast %307 : vector<16x1xf32> to vector<16x32xf32>
    %309 = arith.mulf %304, %308 : vector<16x32xf32>
    %310 = vector.broadcast %37 : vector<1x32xf32> to vector<16x32xf32>
    %311 = arith.mulf %309, %310 : vector<16x32xf32>
    %312 = vector.broadcast %38 : vector<1x32xf32> to vector<16x32xf32>
    %313 = arith.addf %311, %312 : vector<16x32xf32>
    %c0_80 = arith.constant 0 : index
    %c0_81 = arith.constant 0 : index
    %314 = vector.load %arg6[%c0_80, %c0_81] : memref<16x32xf32, #tpu.memory_space<vmem>>, vector<16x32xf32>
    tpu.vector_store %arg6[%c0_80, %c0_81], %313 {strides = array<i32>} : memref<16x32xf32, #tpu.memory_space<vmem>>, vector<16x32xf32>,
    return
  }
}

</mosaic_0001>

<bundles_post_ra>
// kernel: transformer_decoder_layer.1
= control target key start
LH: loop header
LB: loop body
LE: loop exit
PB: predicated region body
PF: predicated region fallthrough
CT: control target
= control target key end

     0   :  { %11 = vsyncpa [#allocation3], 0  ;;  %s3949_s0 = inlined_call_operand.hbm [shape: f32[16,32], index: 0, kind: input, shape index: {}]   ;;  %s3950_s1 = inlined_call_operand.vmem [shape: f32[16,32], index: 1, kind: input, shape index: {}]   ;;  %s3951_s2 = inlined_call_operand.hbm [shape: f32[32,32], index: 2, kind: input, shape index: {}]   ;;  %s3952_s3 = inlined_call_operand.hbm [shape: f32[32,32], index: 3, kind: input, shape index: {}]   ;;  %s3953_s4 = inlined_call_operand.hbm [shape: bf16[7,64,128], index: 4, kind: input, shape index: {}]   ;;  %s3954_s5 = inlined_call_operand.vmem [shape: f32[16,128], index: 5, kind: input, shape index: {}]   ;;  %s3955_s6 = inlined_call_operand.hbm [shape: f32[16,32], index: 6, kind: output, shape index: {}]  }
   0x1   :  { %12 = vsyncpa [#allocation6], 0 }
   0x2   :  { %13 = vsyncpa [#allocation9], 0 }
   0x3   :  { %14 = vsyncpa [#allocation4], 0  ;;  %s3311_s21 = smov [#allocation5]   ;;  %s3312_s23 = smov [#allocation2]  }
   0x4   :  { %s34_s22 = sshll.u32 %s3311_s21, 4  ;;  %s20_s24 = sshll.u32 %s3312_s23, 4  ;;  %s35_s22 = int_to_ptr.vmem [resolvable:$true] %s34_s22  ;;  %s3370_s24 = int_to_ptr.vmem [resolvable:$true] %s20_s24 }
   0x5   :  { %s3193_s27 = scalar_lea.hbm %s3951_s2, 512 }
   0x6   :  { %p3194_p0 = scmp.ne.s32.totalorder %s3951_s2, %s3193_s27  ;;  %p3197_p1 = scmp.lt.u32.totalorder %s3193_s27, %s3951_s2 }
   0x8   :  { %p3199_p2 = pnand %p3197_p1, %p3194_p0 }
   0xa   :  { %3202 = shalt.err (!%p3199_p2)
}
   0xb   :  { %s3203_s8 = scalar_lea.vmem %s35_s22, 512  ;;  %p3208_p4 = scmp.lt.s32.totalorder %s35_s22, %s35_s22 }
   0xc   :  { %p3204_p3 = scmp.ne.s32.totalorder %s35_s22, %s3203_s8  ;;  %p3209_p5 = scmp.lt.s32.totalorder %s3203_s8, %s3203_s8 }
   0xe   :  { %p3210_p6 = por %p3209_p5, %p3208_p4 }
  0x10   :  { %p3211_p7 = pnand %p3210_p6, %p3204_p3 }
  0x12   :  { %3214 = shalt.err (!%p3211_p7)
}
  0x13   :  { %s3313_s9 = smov 128   ;;  %s3314_s10 = smov 8  }
  0x14   :  { %40 = dma.hbm_to_vmem [thread:$0]  %s3951_s2, 512, %s35_s22, [#allocation6], %s3313_s9, %s3313_s9, %s3314_s10  }
  0x15   :  { %s3215_s15 = scalar_lea.hbm %s3949_s0, 256 }
  0x16   :  { %p3216_p8 = scmp.ne.s32.totalorder %s3949_s0, %s3215_s15  ;;  %p3219_p9 = scmp.lt.u32.totalorder %s3215_s15, %s3949_s0 }
  0x18   :  { %p3221_p10 = pnand %p3219_p9, %p3216_p8 }
  0x1a   :  { %3224 = shalt.err (!%p3221_p10)
}
  0x1b   :  { %s3225_s20 = scalar_lea.vmem %s3370_s24, 256  ;;  %p3230_p12 = scmp.lt.s32.totalorder %s3370_s24, %s3370_s24 }
  0x1c   :  { %p3226_p11 = scmp.ne.s32.totalorder %s3370_s24, %s3225_s20  ;;  %p3231_p13 = scmp.lt.s32.totalorder %s3225_s20, %s3225_s20 }
  0x1e   :  { %p3232_p0 = por %p3231_p13, %p3230_p12 }
  0x20   :  { %p3233_p1 = pnand %p3232_p0, %p3226_p11 }
  0x22   :  { %3236 = shalt.err (!%p3233_p1)
}
  0x23   :  { %26 = dma.hbm_to_vmem [thread:$0]  %s3949_s0, 256, %s3370_s24, [#allocation3], %s3313_s9, %s3313_s9, %s3314_s10  }
  0x24   :  { %s3315_s22 = smov [#allocation7]   ;;  %s3316_s25 = smov [#allocation8]  }
  0x25   :  { %s46_s23 = sshll.u32 %s3315_s22, 4  ;;  %s58_s26 = sshll.u32 %s3316_s25, 4  ;;  %s47_s23 = int_to_ptr.vmem [resolvable:$true] %s46_s23  ;;  %s3407_s26 = int_to_ptr.vmem [resolvable:$true] %s58_s26 }
  0x26   :  { %s3237_s29 = scalar_lea.hbm %s3952_s3, 512 }
  0x27   :  { %p3238_p2 = scmp.ne.s32.totalorder %s3952_s3, %s3237_s29  ;;  %p3241_p3 = scmp.lt.u32.totalorder %s3237_s29, %s3952_s3 }
  0x29   :  { %p3243_p4 = pnand %p3241_p3, %p3238_p2 }
  0x2b   :  { %3246 = shalt.err (!%p3243_p4)
}
  0x2c   :  { %s3247_s0 = scalar_lea.vmem %s47_s23, 512  ;;  %p3252_p6 = scmp.lt.s32.totalorder %s47_s23, %s47_s23 }
  0x2d   :  { %p3248_p5 = scmp.ne.s32.totalorder %s47_s23, %s3247_s0  ;;  %p3253_p7 = scmp.lt.s32.totalorder %s3247_s0, %s3247_s0 }
  0x2f   :  { %p3254_p8 = por %p3253_p7, %p3252_p6 }
  0x31   :  { %p3255_p9 = pnand %p3254_p8, %p3248_p5 }
  0x33   :  { %3258 = shalt.err (!%p3255_p9)
}
  0x34   :  { %52 = dma.hbm_to_vmem [thread:$0]  %s3952_s3, 512, %s47_s23, [#allocation6], %s3313_s9, %s3313_s9, %s3314_s10  }
  0x35   :  { %s3259_s15 = scalar_lea.hbm %s3953_s4, 3584 }
  0x36   :  { %p3260_p10 = scmp.ne.s32.totalorder %s3953_s4, %s3259_s15  ;;  %p3263_p11 = scmp.lt.u32.totalorder %s3259_s15, %s3953_s4 }
  0x38   :  { %p3265_p12 = pnand %p3263_p11, %p3260_p10 }
  0x3a   :  { %3268 = shalt.err (!%p3265_p12)
}
  0x3b   :  { %s3269_s20 = scalar_lea.vmem %s3407_s26, 3584  ;;  %p3274_p0 = scmp.lt.s32.totalorder %s3407_s26, %s3407_s26 }
  0x3c   :  { %p3270_p13 = scmp.ne.s32.totalorder %s3407_s26, %s3269_s20  ;;  %p3275_p1 = scmp.lt.s32.totalorder %s3269_s20, %s3269_s20 }
  0x3e   :  { %p3276_p2 = por %p3275_p1, %p3274_p0 }
  0x40   :  { %p3277_p3 = pnand %p3276_p2, %p3270_p13 }
  0x42   :  { %3280 = shalt.err (!%p3277_p3)
}
  0x43   :  { %s3317_s3 = smov 64   ;;  %s3318_s2 = smov 4  }
  0x44   :  { %64 = dma.hbm_to_vmem [thread:$0]  %s3953_s4, 3584, %s3407_s26, [#allocation9], %s3317_s3, %s3317_s3, %s3318_s2  }
  0x45   :  { %3303 = dma.done.wait [#allocation3], 256  }
  0x46   :  { %3304 = vsyncadd [#allocation3], 4294967040 }
  0x47   :  { %3305 = dma.done.wait [#allocation6], 1024  }
  0x48   :  { %3306 = vsyncadd [#allocation6], 4294966272 }
  0x49   :  { %3307 = dma.done.wait [#allocation9], 3584  }
  0x4a   :  { %3308 = vsyncadd [#allocation9], 4294963712  ;;  %v3319_v0 = vmov 0.0   ;;  %vm3320_vm0 = vmmov 0   ;;  %v3449_v1 = vld [vmem:[#allocation2] sm:$0xff]  ;;  %v3451_v2 = vld [vmem:[#allocation2 + $0x8] sm:$0xff]  ;;  %v154_v18 = vlaneseq }
  0x4b   :  { %2767 = vmatprep.subr.bf16.mxu0 %v3319_v0  ;;  %2775 = vmatprep.mubr.msk.bf16.mxu0 %vm3320_vm0, %v3319_v0  ;;  %v3051_v3 = vpack.i.bf16 %v3451_v2, %v3449_v1  ;;  %v3096_v4 = vld [vmem:[#allocation8] sm:$0xff]   ;;  %s3321_s4 = smov 32   ;;  %v3097_v5 = vld [vmem:[#allocation8 + $0x8] sm:$0xff]   ;;  %v3098_v6 = vld [vmem:[#allocation8 + $0x10] sm:$0xff]   ;;  %vm150_vm1 = vcmask 261120   ;;  %vm182_vm2 = vcmask 523264  }
  0x4c   :  { %2779 = vmatprep.subr.bf16.mxu1 %v3319_v0  ;;  %2781 = vmatprep.mubr.msk.bf16.mxu1 %vm3320_vm0, %v3319_v0  ;;  %v3099_v7 = vld [vmem:[#allocation8 + $0x18] sm:$0xff]   ;;  %v3463_v8 = vld [vmem:[%s3950_s1] sm:$0xff]  ;;  %v3479_v19 = vshrl.u32 %v154_v18, 7  ;;  %s3322_s29 = smov 96   ;;  %vm236_vm3 = vcmask 64512   ;;  %s3323_s30 = smov 88  }
  0x4d   :  { %3052 = vrot.lane.b32.xlu0 %v3051_v3, %s3321_s4  ;;  %2768 = vmatpush3.bf16.msra.mxu0 %v3096_v4  ;;  %v3468_v9 = vld [vmem:[%s3950_s1 + $0x8] sm:$0xff]  ;;  %v140_v11 = vadd.f32 %v3463_v8, %v3449_v1  ;;  %v3485_v21 = vld [vmem:[%s3954_s5] sm:$0xff]  ;;  %s3324_s7 = smov 120   ;;  %vm361_vm4 = vcmask 1043456   ;;  %s3325_s8 = smov 56   ;;  %vm1141_vm5 = vcmask 130048  }
  0x4e   :  { %2769 = vmatprep.subr.bf16.mxu0 %v3319_v0  ;;  %v141_v10 = vadd.f32 %v3468_v9, %v3451_v2  ;;  %v156_v20 = vsub.s32 0, %v3479_v19  ;;  %s3326_s11 = smov 80   ;;  %s3327_s0 = smov 112   ;;  %vm1144_vm6 = vcmask 195584  }
  0x4f   :  { %s3328_s24 = smov 48   ;;  %s3329_s12 = smov 72  }
  0x50   :  { %v157_v22 = vrot.slane %v3485_v21, %v156_v20  ;;  %s3330_s13 = smov 104   ;;  %s3331_s14 = smov 40  }
  0x51   :  { %2770 = vmatpush3.bf16.msra.mxu0 %v3097_v5  ;;  %s3332_s15 = smov 16   ;;  %s3333_s16 = smov 24  }
  0x52   :  { %2771 = vmatprep.subr.bf16.mxu0 %v3319_v0 }
  0x55   :  { %2772 = vmatpush3.bf16.msra.mxu0 %v3098_v6 }
  0x56   :  { %2773 = vmatprep.subr.bf16.mxu0 %v3319_v0 }
  0x59   :  { %2774 = vmatpush3.bf16.msra.mxu0 %v3099_v7 }
  0x5a   :  { %2803 = vmatprep.subr.bf16.mxu0 %v3319_v0 }
  0xbf   :  { %v3053_v12 = vpop.permute.xlu0 %3052 }
  0xc0   :  { %v3055_v13 = vunpack.i.h.bf16 %v3053_v12  ;;  %v3054_v14 = vunpack.i.l.bf16 %v3053_v12 }
  0xc2   :  { %v152_v15 = vsel %vm150_vm1, %v141_v10, %v3055_v13  ;;  %v151_v16 = vsel %vm150_vm1, %v140_v11, %v3054_v14 }
  0xc3   :  { %v153_v17 = vpack.c.bf16 %v152_v15, %v151_v16 }
  0xc5   :  { %2776 = vmatmul.mubr.msk.bf16.vlgmr.msra.gmra.mrb[0].mxu0 %vm182_vm2, %v153_v17 }
  0xc6   :  { %2805 = vmatprep.mubr.msk.bf16.mxu0 %vm3320_vm0, %v3319_v0 }
 0x198   :  { %v220_v23 = vpop.f32.mrb[0].mxu0 }
 0x199   :  { %v221_v24 = vadd.f32 %v220_v23, %v157_v22  ;;  %v2777_v25 = vpop.f32.mrb[1].mxu0 }
 0x19a   :  { %v223_v26 = vpop.f32.mrb[2].mxu0 }
 0x19b   :  { %v3490_v27 = vpack.c.bf16 %v221_v24, %v221_v24  ;;  %v224_v28 = vadd.f32 %v223_v26, %v157_v22  ;;  %v2778_v29 = vpop.f32.mrb[3].mxu0  ;;  %v227_v33 = vmul.f32 0.35355338, %v221_v24 }
 0x19d   :  { %v3492_v30 = vpack.c.bf16 %v224_v28, %v224_v28  ;;  %234 = vrot.lane.b32.xlu0 %v3490_v27, %s3322_s29  ;;  %v3500_v35 = vpack.c.bf16 %v227_v33, %v227_v33  ;;  %v228_v37 = vmul.f32 0.35355338, %v224_v28 }
 0x19f   :  { %284 = vrot.lane.b32.xlu1 %v3492_v30, %s3322_s29  ;;  %v3508_v38 = vpack.c.bf16 %v228_v37, %v228_v37 }
 0x20f   :  { %v235_v31 = vpop.permute.xlu0 %234 }
 0x210   :  { %v241_v32 = vsel %vm236_vm3, %v235_v31, 0 }
 0x211   :  { %2780 = vmatpush3.bf16.xpose.msra.mxu1 %v241_v32  ;;  %v285_v34 = vpop.permute.xlu1 %284 }
 0x212   :  { %2785 = vmatprep.subr.bf16.mxu1 %v3319_v0  ;;  %v290_v36 = vsel %vm236_vm3, %v285_v34, 0 }
 0x218   :  { %2782 = vmatmul.mubr.msk.bf16.vlgmr.msra.gmra.mrb[0].mxu1 %vm236_vm3, %v3500_v35 }
 0x219   :  { %2786 = vmatpush3.bf16.xpose.msra.mxu1 %v290_v36  ;;  %2787 = vmatprep.mubr.msk.bf16.mxu1 %vm3320_vm0, %v3319_v0 }
 0x21a   :  { %2791 = vmatprep.subr.bf16.mxu1 %v3319_v0 }
 0x220   :  { %2788 = vmatmul.mubr.msk.bf16.vlgmr.msra.gmra.mrb[4].mxu1 %vm236_vm3, %v3508_v38 }
 0x221   :  { %2793 = vmatprep.mubr.msk.bf16.mxu1 %vm3320_vm0, %v3319_v0 }
 0x2eb   :  { %v277_v39 = vpop.f32.mrb[0].mxu1 }
 0x2ec   :  { %v2783_v40 = vpop.f32.mrb[1].mxu1  ;;  %v332_v41 = vsel %vm236_vm3, %v277_v39, -inf }
 0x2ed   :  { %v280_v42 = vpop.f32.mrb[2].mxu1  ;;  %333 = vmax.xlane.f32.xlu1 %v332_v41 }
 0x2ee   :  { %v2784_v43 = vpop.f32.mrb[3].mxu1 }
 0x2f3   :  { %v326_v44 = vpop.f32.mrb[4].mxu1 }
 0x2f4   :  { %v2789_v45 = vpop.f32.mrb[5].mxu1  ;;  %v335_v46 = vsel %vm236_vm3, %v326_v44, -inf }
 0x2f5   :  { %336 = vmax.xlane.f32.xlu0 %v335_v46  ;;  %v329_v47 = vpop.f32.mrb[6].mxu1 }
 0x2f6   :  { %v2790_v48 = vpop.f32.mrb[7].mxu1 }
 0x2fe   :  { %405 = vrot.lane.b32.xlu1 %v3492_v30, %s3317_s3 }
 0x37a   :  { %v334_v49 = vpop.xlane.xlu1 %333 }
 0x37b   :  { %v338_v50 = vsub.f32 %v277_v39, %v334_v49 }
 0x37d   :  { %v340_v51 = vmul.f32 1.442695, %v338_v50 }
 0x37e   :  { %v406_v60 = vpop.permute.xlu1 %405 }
 0x37f   :  { %3116 = vpow2.f32 %v340_v51  ;;  %v411_v10 = vsel %vm361_vm4, %v406_v60, 0 }
 0x382   :  { %v337_v52 = vpop.xlane.xlu0 %336 }
 0x383   :  { %v339_v53 = vsub.f32 %v326_v44, %v337_v52 }
 0x385   :  { %v342_v54 = vmul.f32 1.442695, %v339_v53 }
 0x387   :  { %3118 = vpow2.f32 %v342_v54 }
 0x389   :  { %v3117_v55 = vpop.eup %3116 }
 0x38a   :  { %v344_v56 = vsel %vm236_vm3, %v3117_v55, 0.0 }
 0x38b   :  { %345 = vadd.xlane.f32.xlu0 %v344_v56 }
 0x391   :  { %v3119_v57 = vpop.eup %3118 }
 0x392   :  { %v347_v58 = vsel %vm236_vm3, %v3119_v57, 0.0 }
 0x393   :  { %348 = vadd.xlane.f32.xlu1 %v347_v58 }
 0x3a1   :  { %356 = vrot.lane.b32.xlu0 %v3490_v27, %s3317_s3 }
 0x3a4   :  { %456 = vrot.lane.b32.xlu1 %v3490_v27, %s3323_s30 }
 0x3a5   :  { %507 = vrot.lane.b32.xlu0 %v3492_v30, %s3323_s30 }
 0x3a8   :  { %454 = vrot.lane.b32.xlu1 %v3500_v35, %s3324_s7 }
 0x3a9   :  { %505 = vrot.lane.b32.xlu0 %v3508_v38, %s3324_s7 }
 0x418   :  { %v346_v59 = vpop.xlane.xlu0 %345 }
 0x419   :  { %3120 = vrcp.f32 %v346_v59 }
 0x41c   :  { %v357_v61 = vpop.permute.xlu0 %356 }
 0x41d   :  { %v363_v62 = vsel %vm361_vm4, %v357_v61, 0 }
 0x41e   :  { %2792 = vmatpush3.bf16.msra.mxu1 %v363_v62 }
 0x41f   :  { %2797 = vmatprep.subr.bf16.mxu1 %v3319_v0 }
 0x420   :  { %v349_v63 = vpop.xlane.xlu1 %348  ;;  %v508_v14 = vpop.permute.xlu0 %507 }
 0x421   :  { %3122 = vrcp.f32 %v349_v63  ;;  %v513_v16 = vsel %vm236_vm3, %v508_v14, 0 }
 0x423   :  { %v3121_v3 = vpop.eup %3120 }
 0x424   :  { %v352_v4 = vmul.f32 %v3121_v3, %v3117_v55  ;;  %v457_v5 = vpop.permute.xlu1 %456  ;;  %v506_v17 = vpop.permute.xlu0 %505 }
 0x425   :  { %v462_v6 = vsel %vm236_vm3, %v457_v5, 0 }
 0x426   :  { %2804 = vmatpush3.bf16.xpose.msra.mxu0 %v462_v6  ;;  %v354_v7 = vpack.c.bf16 %v352_v4, %v352_v4 }
 0x427   :  { %2815 = vmatprep.subr.bf16.mxu0 %v3319_v0 }
 0x428   :  { %2794 = vmatmul.mubr.msk.bf16.vlgmr.msra.gmra.mrb[8].mxu1 %vm236_vm3, %v354_v7  ;;  %v455_v13 = vpop.permute.xlu1 %454 }
 0x429   :  { %2798 = vmatpush3.bf16.msra.mxu1 %v411_v10  ;;  %2799 = vmatprep.mubr.msk.bf16.mxu1 %vm3320_vm0, %v3319_v0 }
 0x42a   :  { %2809 = vmatprep.subr.bf16.mxu1 %v3319_v0 }
 0x42b   :  { %v3123_v11 = vpop.eup %3122 }
 0x42c   :  { %v353_v12 = vmul.f32 %v3123_v11, %v3119_v57 }
 0x42d   :  { %2806 = vmatmul.mubr.msk.bf16.vlgmr.msra.gmra.mrb[4].mxu0 %vm236_vm3, %v455_v13 }
 0x42e   :  { %v355_v15 = vpack.c.bf16 %v353_v12, %v353_v12  ;;  %2817 = vmatprep.mubr.msk.bf16.mxu0 %vm3320_vm0, %v3319_v0 }
 0x430   :  { %2800 = vmatmul.mubr.msk.bf16.vlgmr.msra.gmra.mrb[12].mxu1 %vm236_vm3, %v355_v15 }
 0x431   :  { %2811 = vmatprep.mubr.msk.bf16.mxu1 %vm3320_vm0, %v3319_v0 }
 0x432   :  { %2810 = vmatpush3.bf16.xpose.msra.mxu1 %v513_v16 }
 0x433   :  { %2821 = vmatprep.subr.bf16.mxu1 %v3319_v0 }
 0x439   :  { %2812 = vmatmul.mubr.msk.bf16.vlgmr.msra.gmra.mrb[16].mxu1 %vm236_vm3, %v506_v17 }
 0x43a   :  { %2823 = vmatprep.mubr.msk.bf16.mxu1 %vm3320_vm0, %v3319_v0 }
 0x4fb   :  { %v3550_v18 = vpop.f32.mrb[8].mxu1 }
 0x4fc   :  { %v2795_v22 = vpop.f32.mrb[9].mxu1 }
 0x4fd   :  { %v402_v23 = vpop.f32.mrb[10].mxu1 }
 0x4fe   :  { %v2796_v24 = vpop.f32.mrb[11].mxu1 }
 0x500   :  { %v498_v25 = vpop.f32.mrb[4].mxu0 }
 0x501   :  { %v2807_v26 = vpop.f32.mrb[5].mxu0  ;;  %v555_v28 = vsel %vm236_vm3, %v498_v25, -inf }
 0x502   :  { %556 = vmax.xlane.f32.xlu1 %v555_v28  ;;  %v501_v29 = vpop.f32.mrb[6].mxu0 }
 0x503   :  { %v3553_v31 = vpop.f32.mrb[12].mxu1  ;;  %v2808_v32 = vpop.f32.mrb[7].mxu0 }
 0x504   :  { %v2801_v33 = vpop.f32.mrb[13].mxu1 }
 0x505   :  { %v450_v34 = vpop.f32.mrb[14].mxu1 }
 0x506   :  { %v2802_v36 = vpop.f32.mrb[15].mxu1 }
 0x50c   :  { %v549_v37 = vpop.f32.mrb[16].mxu1 }
 0x50d   :  { %v2813_v39 = vpop.f32.mrb[17].mxu1  ;;  %v558_v40 = vsel %vm236_vm3, %v549_v37, -inf }
 0x50e   :  { %559 = vmax.xlane.f32.xlu0 %v558_v40  ;;  %v552_v41 = vpop.f32.mrb[18].mxu1 }
 0x50f   :  { %v2814_v42 = vpop.f32.mrb[19].mxu1 }
 0x513   :  { %627 = vrot.lane.b32.xlu1 %v3492_v30, %s3325_s8 }
 0x58f   :  { %v557_v43 = vpop.xlane.xlu1 %556 }
 0x590   :  { %v561_v44 = vsub.f32 %v498_v25, %v557_v43 }
 0x592   :  { %v563_v45 = vmul.f32 1.442695, %v561_v44 }
 0x593   :  { %v628_v46 = vpop.permute.xlu1 %627 }
 0x594   :  { %3124 = vpow2.f32 %v563_v45  ;;  %v633_v47 = vsel %vm361_vm4, %v628_v46, 0 }
 0x595   :  { %2822 = vmatpush3.bf16.msra.mxu1 %v633_v47 }
 0x596   :  { %2833 = vmatprep.subr.bf16.mxu1 %v3319_v0 }
 0x59b   :  { %v560_v48 = vpop.xlane.xlu0 %559 }
 0x59c   :  { %v562_v49 = vsub.f32 %v549_v37, %v560_v48 }
 0x59e   :  { %v3125_v50 = vpop.eup %3124  ;;  %v565_v51 = vmul.f32 1.442695, %v562_v49 }
 0x59f   :  { %v567_v52 = vsel %vm236_vm3, %v3125_v50, 0.0 }
 0x5a0   :  { %3126 = vpow2.f32 %v565_v51  ;;  %568 = vadd.xlane.f32.xlu0 %v567_v52 }
 0x5aa   :  { %v3127_v53 = vpop.eup %3126 }
 0x5ab   :  { %v570_v54 = vsel %vm236_vm3, %v3127_v53, 0.0 }
 0x5ac   :  { %571 = vadd.xlane.f32.xlu1 %v570_v54 }
 0x5b6   :  { %579 = vrot.lane.b32.xlu0 %v3490_v27, %s3325_s8 }
 0x5ba   :  { %727 = vrot.lane.b32.xlu0 %v3492_v30, %s3326_s11 }
 0x5bd   :  { %677 = vrot.lane.b32.xlu1 %v3490_v27, %s3326_s11 }
 0x5be   :  { %725 = vrot.lane.b32.xlu0 %v3508_v38, %s3327_s0 }
 0x5c1   :  { %675 = vrot.lane.b32.xlu1 %v3500_v35, %s3327_s0 }
 0x62d   :  { %v569_v55 = vpop.xlane.xlu0 %568 }
 0x62e   :  { %3128 = vrcp.f32 %v569_v55 }
 0x631   :  { %v580_v56 = vpop.permute.xlu0 %579 }
 0x632   :  { %v585_v57 = vsel %vm361_vm4, %v580_v56, 0 }
 0x633   :  { %2816 = vmatpush3.bf16.msra.mxu0 %v585_v57 }
 0x634   :  { %2827 = vmatprep.subr.bf16.mxu0 %v3319_v0 }
 0x635   :  { %v728_v6 = vpop.permute.xlu0 %727 }
 0x636   :  { %v733_v10 = vsel %vm236_vm3, %v728_v6, 0 }
 0x638   :  { %v3129_v58 = vpop.eup %3128 }
 0x639   :  { %v575_v59 = vmul.f32 %v3129_v58, %v3125_v50  ;;  %v572_v60 = vpop.xlane.xlu1 %571  ;;  %v726_v11 = vpop.permute.xlu0 %725 }
 0x63a   :  { %3130 = vrcp.f32 %v572_v60 }
 0x63b   :  { %v577_v61 = vpack.c.bf16 %v575_v59, %v575_v59 }
 0x63d   :  { %v678_v62 = vpop.permute.xlu1 %677  ;;  %2818 = vmatmul.mubr.msk.bf16.vlgmr.msra.gmra.mrb[8].mxu0 %vm236_vm3, %v577_v61 }
 0x63e   :  { %v683_v63 = vsel %vm236_vm3, %v678_v62, 0  ;;  %2829 = vmatprep.mubr.msk.bf16.mxu0 %vm3320_vm0, %v3319_v0 }
 0x63f   :  { %2828 = vmatpush3.bf16.xpose.msra.mxu0 %v683_v63 }
 0x640   :  { %2839 = vmatprep.subr.bf16.mxu0 %v3319_v0 }
 0x641   :  { %v676_v5 = vpop.permute.xlu1 %675 }
 0x644   :  { %v3131_v3 = vpop.eup %3130 }
 0x645   :  { %v576_v4 = vmul.f32 %v3131_v3, %v3127_v53 }
 0x646   :  { %2830 = vmatmul.mubr.msk.bf16.vlgmr.msra.gmra.mrb[12].mxu0 %vm236_vm3, %v676_v5 }
 0x647   :  { %v578_v7 = vpack.c.bf16 %v576_v4, %v576_v4  ;;  %2841 = vmatprep.mubr.msk.bf16.mxu0 %vm3320_vm0, %v3319_v0 }
 0x649   :  { %2824 = vmatmul.mubr.msk.bf16.vlgmr.msra.gmra.mrb[20].mxu1 %vm236_vm3, %v578_v7 }
 0x64a   :  { %2834 = vmatpush3.bf16.xpose.msra.mxu1 %v733_v10  ;;  %2835 = vmatprep.mubr.msk.bf16.mxu1 %vm3320_vm0, %v3319_v0 }
 0x64b   :  { %2845 = vmatprep.subr.bf16.mxu1 %v3319_v0 }
 0x651   :  { %2836 = vmatmul.mubr.msk.bf16.vlgmr.msra.gmra.mrb[24].mxu1 %vm236_vm3, %v726_v11 }
 0x652   :  { %2847 = vmatprep.mubr.msk.bf16.mxu1 %vm3320_vm0, %v3319_v0 }
 0x710   :  { %v3588_v12 = vpop.f32.mrb[8].mxu0 }
 0x711   :  { %v2819_v13 = vpop.f32.mrb[9].mxu0 }
 0x712   :  { %v624_v14 = vpop.f32.mrb[10].mxu0 }
 0x713   :  { %v2820_v15 = vpop.f32.mrb[11].mxu0 }
 0x719   :  { %v719_v16 = vpop.f32.mrb[12].mxu0 }
 0x71a   :  { %v2831_v17 = vpop.f32.mrb[13].mxu0  ;;  %v775_v22 = vsel %vm236_vm3, %v719_v16, -inf }
 0x71b   :  { %776 = vmax.xlane.f32.xlu1 %v775_v22  ;;  %v722_v23 = vpop.f32.mrb[14].mxu0 }
 0x71c   :  { %v3591_v24 = vpop.f32.mrb[20].mxu1  ;;  %v2832_v25 = vpop.f32.mrb[15].mxu0 }
 0x71d   :  { %v3056_v26 = vpack.i.bf16 %v3591_v24, %v3588_v12  ;;  %v2825_v28 = vpop.f32.mrb[21].mxu1 }
 0x71e   :  { %v672_v29 = vpop.f32.mrb[22].mxu1 }
 0x71f   :  { %v2826_v32 = vpop.f32.mrb[23].mxu1 }
 0x724   :  { %v769_v33 = vpop.f32.mrb[24].mxu1 }
 0x725   :  { %v2837_v34 = vpop.f32.mrb[25].mxu1  ;;  %v778_v36 = vsel %vm236_vm3, %v769_v33, -inf }
 0x726   :  { %779 = vmax.xlane.f32.xlu0 %v778_v36  ;;  %v772_v37 = vpop.f32.mrb[26].mxu1 }
 0x727   :  { %v2838_v39 = vpop.f32.mrb[27].mxu1 }
 0x72c   :  { %847 = vrot.lane.b32.xlu1 %v3492_v30, %s3328_s24 }
 0x7a8   :  { %v777_v40 = vpop.xlane.xlu1 %776 }
 0x7a9   :  { %v781_v41 = vsub.f32 %v719_v16, %v777_v40 }
 0x7ab   :  { %v783_v42 = vmul.f32 1.442695, %v781_v41 }
 0x7ac   :  { %v848_v43 = vpop.permute.xlu1 %847 }
 0x7ad   :  { %3132 = vpow2.f32 %v783_v42  ;;  %v853_v44 = vsel %vm361_vm4, %v848_v43, 0 }
 0x7ae   :  { %2846 = vmatpush3.bf16.msra.mxu1 %v853_v44 }
 0x7af   :  { %2857 = vmatprep.subr.bf16.mxu1 %v3319_v0 }
 0x7b3   :  { %v780_v45 = vpop.xlane.xlu0 %779 }
 0x7b4   :  { %v782_v46 = vsub.f32 %v769_v33, %v780_v45 }
 0x7b6   :  { %v785_v47 = vmul.f32 1.442695, %v782_v46 }
 0x7b7   :  { %v3133_v48 = vpop.eup %3132 }
 0x7b8   :  { %3134 = vpow2.f32 %v785_v47  ;;  %v787_v49 = vsel %vm236_vm3, %v3133_v48, 0.0 }
 0x7b9   :  { %788 = vadd.xlane.f32.xlu0 %v787_v49 }
 0x7c2   :  { %v3135_v50 = vpop.eup %3134 }
 0x7c3   :  { %v790_v51 = vsel %vm236_vm3, %v3135_v50, 0.0 }
 0x7c4   :  { %791 = vadd.xlane.f32.xlu1 %v790_v51 }
 0x7cf   :  { %799 = vrot.lane.b32.xlu0 %v3490_v27, %s3328_s24 }
 0x7d3   :  { %947 = vrot.lane.b32.xlu0 %v3492_v30, %s3329_s12 }
 0x7d5   :  { %897 = vrot.lane.b32.xlu1 %v3490_v27, %s3329_s12 }
 0x7d7   :  { %945 = vrot.lane.b32.xlu0 %v3508_v38, %s3330_s13 }
 0x7d9   :  { %895 = vrot.lane.b32.xlu1 %v3500_v35, %s3330_s13 }
 0x846   :  { %v789_v52 = vpop.xlane.xlu0 %788 }
 0x847   :  { %3136 = vrcp.f32 %v789_v52 }
 0x84a   :  { %v800_v53 = vpop.permute.xlu0 %799 }
 0x84b   :  { %v805_v54 = vsel %vm361_vm4, %v800_v53, 0 }
 0x84c   :  { %2840 = vmatpush3.bf16.msra.mxu0 %v805_v54 }
 0x84d   :  { %2851 = vmatprep.subr.bf16.mxu0 %v3319_v0 }
 0x84e   :  { %v948_v62 = vpop.permute.xlu0 %947 }
 0x84f   :  { %v953_v3 = vsel %vm236_vm3, %v948_v62, 0 }
 0x851   :  { %v3137_v55 = vpop.eup %3136  ;;  %v792_v56 = vpop.xlane.xlu1 %791 }
 0x852   :  { %v795_v57 = vmul.f32 %v3137_v55, %v3133_v48  ;;  %3138 = vrcp.f32 %v792_v56  ;;  %v946_v4 = vpop.permute.xlu0 %945  ;;  %v3100_v55 = vld [vmem:[#allocation8 + $0x20] sm:$0xff]  }
 0x854   :  { %v797_v58 = vpack.c.bf16 %v795_v57, %v795_v57 }
 0x855   :  { %v898_v59 = vpop.permute.xlu1 %897 }
 0x856   :  { %v903_v60 = vsel %vm236_vm3, %v898_v59, 0  ;;  %2842 = vmatmul.mubr.msk.bf16.vlgmr.msra.gmra.mrb[16].mxu0 %vm236_vm3, %v797_v58  ;;  %v3101_v59 = vld [vmem:[#allocation8 + $0x28] sm:$0xff]  }
 0x857   :  { %2852 = vmatpush3.bf16.xpose.msra.mxu0 %v903_v60  ;;  %2853 = vmatprep.mubr.msk.bf16.mxu0 %vm3320_vm0, %v3319_v0 }
 0x858   :  { %2863 = vmatprep.subr.bf16.mxu0 %v3319_v0 }
 0x859   :  { %v896_v61 = vpop.permute.xlu1 %895 }
 0x85c   :  { %v3139_v35 = vpop.eup %3138 }
 0x85d   :  { %v796_v38 = vmul.f32 %v3139_v35, %v3135_v50 }
 0x85e   :  { %2854 = vmatmul.mubr.msk.bf16.vlgmr.msra.gmra.mrb[20].mxu0 %vm236_vm3, %v896_v61 }
 0x85f   :  { %v798_v63 = vpack.c.bf16 %v796_v38, %v796_v38  ;;  %2865 = vmatprep.mubr.msk.bf16.mxu0 %vm3320_vm0, %v3319_v0 }
 0x861   :  { %2848 = vmatmul.mubr.msk.bf16.vlgmr.msra.gmra.mrb[28].mxu1 %vm236_vm3, %v798_v63 }
 0x862   :  { %2858 = vmatpush3.bf16.xpose.msra.mxu1 %v953_v3  ;;  %2859 = vmatprep.mubr.msk.bf16.mxu1 %vm3320_vm0, %v3319_v0 }
 0x863   :  { %2869 = vmatprep.subr.bf16.mxu1 %v3319_v0 }
 0x869   :  { %2860 = vmatmul.mubr.msk.bf16.vlgmr.msra.gmra.mrb[32].mxu1 %vm236_vm3, %v946_v4 }
 0x86a   :  { %2871 = vmatprep.mubr.msk.bf16.mxu1 %vm3320_vm0, %v3319_v0 }
 0x929   :  { %v841_v5 = vpop.f32.mrb[16].mxu0 }
 0x92a   :  { %v2843_v6 = vpop.f32.mrb[17].mxu0 }
 0x92b   :  { %v844_v7 = vpop.f32.mrb[18].mxu0 }
 0x92c   :  { %v2844_v10 = vpop.f32.mrb[19].mxu0 }
 0x931   :  { %v939_v11 = vpop.f32.mrb[20].mxu0 }
 0x932   :  { %v2855_v13 = vpop.f32.mrb[21].mxu0  ;;  %v995_v14 = vsel %vm236_vm3, %v939_v11, -inf }
 0x933   :  { %996 = vmax.xlane.f32.xlu1 %v995_v14  ;;  %v942_v15 = vpop.f32.mrb[22].mxu0 }
 0x934   :  { %v889_v16 = vpop.f32.mrb[28].mxu1  ;;  %v2856_v17 = vpop.f32.mrb[23].mxu0 }
 0x935   :  { %v3061_v22 = vpack.i.bf16 %v889_v16, %v841_v5  ;;  %v2849_v23 = vpop.f32.mrb[29].mxu1 }
 0x936   :  { %v892_v25 = vpop.f32.mrb[30].mxu1 }
 0x937   :  { %v2850_v28 = vpop.f32.mrb[31].mxu1 }
 0x93c   :  { %v989_v29 = vpop.f32.mrb[32].mxu1 }
 0x93d   :  { %v2861_v32 = vpop.f32.mrb[33].mxu1  ;;  %v998_v33 = vsel %vm236_vm3, %v989_v29, -inf }
 0x93e   :  { %999 = vmax.xlane.f32.xlu0 %v998_v33  ;;  %v992_v34 = vpop.f32.mrb[34].mxu1 }
 0x93f   :  { %v2862_v36 = vpop.f32.mrb[35].mxu1 }
 0x9c0   :  { %v997_v37 = vpop.xlane.xlu1 %996 }
 0x9c1   :  { %v1001_v39 = vsub.f32 %v939_v11, %v997_v37 }
 0x9c3   :  { %v1003_v40 = vmul.f32 1.442695, %v1001_v39 }
 0x9c5   :  { %3140 = vpow2.f32 %v1003_v40 }
 0x9cb   :  { %v1000_v41 = vpop.xlane.xlu0 %999 }
 0x9cc   :  { %v1002_v42 = vsub.f32 %v989_v29, %v1000_v41 }
 0x9ce   :  { %v1005_v43 = vmul.f32 1.442695, %v1002_v42 }
 0x9cf   :  { %v3141_v44 = vpop.eup %3140 }
 0x9d0   :  { %3142 = vpow2.f32 %v1005_v43  ;;  %v1007_v45 = vsel %vm236_vm3, %v3141_v44, 0.0  ;;  %v84_v43 = vld [vmem:[#allocation5] sm:$0xff] }
 0x9d1   :  { %1008 = vadd.xlane.f32.xlu0 %v1007_v45 }
 0x9da   :  { %v3143_v46 = vpop.eup %3142 }
 0x9db   :  { %v1010_v47 = vsel %vm236_vm3, %v3143_v46, 0.0 }
 0x9dc   :  { %1011 = vadd.xlane.f32.xlu1 %v1010_v47 }
 0x9e7   :  { %1019 = vrot.lane.b32.xlu0 %v3490_v27, %s3331_s14 }
 0x9eb   :  { %3062 = vrot.lane.b32.xlu0 %v3061_v22, %s3332_s15 }
 0x9ed   :  { %1067 = vrot.lane.b32.xlu1 %v3492_v30, %s3331_s14 }
 0x9f1   :  { %3057 = vrot.lane.b32.xlu1 %v3056_v26, %s3314_s10 }
 0xa5e   :  { %v1009_v48 = vpop.xlane.xlu0 %1008 }
 0xa5f   :  { %3144 = vrcp.f32 %v1009_v48 }
 0xa62   :  { %v1020_v49 = vpop.permute.xlu0 %1019 }
 0xa63   :  { %v1025_v50 = vsel %vm361_vm4, %v1020_v49, 0 }
 0xa64   :  { %2864 = vmatpush3.bf16.msra.mxu0 %v1025_v50 }
 0xa65   :  { %2875 = vmatprep.subr.bf16.mxu0 %v3319_v0 }
 0xa66   :  { %v3063_v6 = vpop.permute.xlu0 %3062 }
 0xa67   :  { %v3065_v11 = vunpack.i.h.bf16 %v3063_v6  ;;  %v3064_v13 = vunpack.i.l.bf16 %v3063_v6 }
 0xa69   :  { %v3145_v51 = vpop.eup %3144  ;;  %v1012_v27 = vpop.xlane.xlu1 %1011 }
 0xa6a   :  { %v1015_v52 = vmul.f32 %v3145_v51, %v3141_v44  ;;  %3146 = vrcp.f32 %v1012_v27  ;;  %v85_v44 = vld [vmem:[#allocation5 + $0x8] sm:$0xff] }
 0xa6b   :  { %v3071_v45 = vpack.i.bf16 %v85_v44, %v84_v43 }
 0xa6c   :  { %v1017_v53 = vpack.c.bf16 %v1015_v52, %v1015_v52 }
 0xa6d   :  { %v1068_v54 = vpop.permute.xlu1 %1067 }
 0xa6e   :  { %v1073_v30 = vsel %vm361_vm4, %v1068_v54, 0  ;;  %2866 = vmatmul.mubr.msk.bf16.vlgmr.msra.gmra.mrb[24].mxu0 %vm236_vm3, %v1017_v53  ;;  %v3102_v53 = vld [vmem:[#allocation8 + $0x60] sm:$0xff]   ;;  %v3103_v54 = vld [vmem:[#allocation8 + $0x68] sm:$0xff]  }
 0xa6f   :  { %2870 = vmatpush3.bf16.msra.mxu1 %v1073_v30  ;;  %2879 = vmatprep.mubr.msk.bf16.mxu0 %vm3320_vm0, %v3319_v0  ;;  %v86_v30 = vld [vmem:[#allocation5 + $0x10] sm:$0xff] }
 0xa70   :  { %2883 = vmatprep.subr.bf16.mxu1 %v3319_v0  ;;  %2876 = vmatpush3.bf16.msra.mxu0 %v3100_v55 }
 0xa71   :  { %2877 = vmatprep.subr.bf16.mxu0 %v3319_v0  ;;  %v3058_v3 = vpop.permute.xlu1 %3057 }
 0xa72   :  { %v3060_v4 = vunpack.i.h.bf16 %v3058_v3  ;;  %v3059_v5 = vunpack.i.l.bf16 %v3058_v3  ;;  %v3106_v3 = vld [vmem:[#allocation8 + $0x40] sm:$0xff]  }
 0xa74   :  { %v3147_v12 = vpop.eup %3146  ;;  %2878 = vmatpush3.bf16.msra.mxu0 %v3101_v59  ;;  %v1140_v7 = vsel %vm236_vm3, %v3553_v31, %v3060_v4  ;;  %v1139_v10 = vsel %vm236_vm3, %v3550_v18, %v3059_v5  ;;  %v1150_v18 = vsub.s32 1, %v3479_v19  ;;  %v3107_v4 = vld [vmem:[#allocation8 + $0x48] sm:$0xff]  }
 0xa75   :  { %v1016_v24 = vmul.f32 %v3147_v12, %v3143_v46  ;;  %v1142_v17 = vsel %vm1141_vm5, %v1139_v10, %v3064_v13  ;;  %v1143_v22 = vsel %vm1141_vm5, %v1140_v7, %v3065_v11  ;;  %2891 = vmatprep.subr.bf16.mxu0 %v3102_v53  ;;  %v87_v12 = vld [vmem:[#allocation5 + $0x18] sm:$0xff]  ;;  %v90_v10 = vld [vmem:[#allocation7 + $0x10] sm:$0xff] }
 0xa76   :  { %v1151_v31 = vrot.slane %v3485_v21, %v1150_v18  ;;  %v3076_v55 = vpack.i.bf16 %v87_v12, %v86_v30  ;;  %v91_v11 = vld [vmem:[#allocation7 + $0x18] sm:$0xff] }
 0xa77   :  { %v1018_v26 = vpack.c.bf16 %v1016_v24, %v1016_v24  ;;  %v88_v24 = vld [vmem:[#allocation7] sm:$0xff] }
 0xa79   :  { %2872 = vmatmul.mubr.msk.bf16.vlgmr.msra.gmra.mrb[36].mxu1 %vm236_vm3, %v1018_v26  ;;  %v89_v26 = vld [vmem:[#allocation7 + $0x8] sm:$0xff] }
 0xa7a   :  { %2887 = vmatprep.mubr.msk.bf16.mxu1 %vm3320_vm0, %v3319_v0  ;;  %2884 = vmatpush3.bf16.msra.mxu1 %v3106_v3 }
 0xa7b   :  { %2885 = vmatprep.subr.bf16.mxu1 %v3319_v0 }
 0xa7e   :  { %2886 = vmatpush3.bf16.msra.mxu1 %v3107_v4 }
 0xa7f   :  { %2903 = vmatprep.subr.bf16.mxu1 %v3319_v0 }
 0xb41   :  { %v1061_v56 = vpop.f32.mrb[24].mxu0 }
 0xb42   :  { %v2867_v57 = vpop.f32.mrb[25].mxu0 }
 0xb43   :  { %v1064_v58 = vpop.f32.mrb[26].mxu0  ;;  %v1313_v57 = vadd.f32 %v89_v26, %v85_v44 }
 0xb44   :  { %v2868_v60 = vpop.f32.mrb[27].mxu0  ;;  %v1312_v58 = vadd.f32 %v88_v24, %v84_v43 }
 0xb4c   :  { %v1109_v35 = vpop.f32.mrb[36].mxu1 }
 0xb4d   :  { %v3066_v38 = vpack.i.bf16 %v1109_v35, %v1061_v56  ;;  %v2873_v61 = vpop.f32.mrb[37].mxu1  ;;  %v3104_v56 = vld [vmem:[#allocation8 + $0x70] sm:$0xff]  }
 0xb4e   :  { %v1112_v62 = vpop.f32.mrb[38].mxu1 }
 0xb4f   :  { %v2874_v63 = vpop.f32.mrb[39].mxu1  ;;  %3067 = vrot.lane.b32.xlu1 %v3066_v38, %s3333_s16  ;;  %v3105_v38 = vld [vmem:[#allocation8 + $0x78] sm:$0xff]  }
 0xbc1   :  { %v3068_v14 = vpop.permute.xlu1 %3067 }
 0xbc2   :  { %v3070_v15 = vunpack.i.h.bf16 %v3068_v14  ;;  %v3069_v16 = vunpack.i.l.bf16 %v3068_v14 }
 0xbc4   :  { %v1146_v23 = vsel %vm1144_vm6, %v1143_v22, %v3070_v15  ;;  %v1145_v25 = vsel %vm1144_vm6, %v1142_v17, %v3069_v16  ;;  %v1315_v15 = vadd.f32 %v91_v11, %v87_v12  ;;  %v1314_v16 = vadd.f32 %v90_v10, %v86_v30 }
 0xbc5   :  { %v1147_v28 = vpack.c.bf16 %v1146_v23, %v1145_v25  ;;  %v1254_v12 = vsub.s32 2, %v3479_v19 }
 0xbc7   :  { %2880 = vmatmul.mubr.msk.bf16.vlgmr.msra.gmra.mrb[28].mxu0 %vm150_vm1, %v1147_v28  ;;  %v1239_v28 = vsub.s32 7, %v3479_v19  ;;  %v1255_v24 = vrot.slane %v3485_v21, %v1254_v12 }
 0xbc8   :  { %2892 = vmatpush3.bf16.msra.mxu0 %v3102_v53 }
 0xbc9   :  { %2893 = vmatprep.subr.bf16.mxu0 %v3103_v54 }
 0xbcc   :  { %2894 = vmatpush3.bf16.msra.mxu0 %v3103_v54 }
 0xbcd   :  { %2895 = vmatprep.subr.bf16.mxu0 %v3104_v56 }
 0xbd0   :  { %2896 = vmatpush3.bf16.msra.mxu0 %v3104_v56 }
 0xbd1   :  { %2897 = vmatprep.subr.bf16.mxu0 %v3105_v38 }
 0xbd4   :  { %2898 = vmatpush3.bf16.msra.mxu0 %v3105_v38 }
 0xbd5   :  { %2915 = vmatprep.subr.bf16.mxu0 %v3319_v0 }
 0xc9a   :  { %v1201_v29 = vpop.f32.mrb[28].mxu0 }
 0xc9b   :  { %v1202_v32 = vadd.f32 %v1201_v29, %v1151_v31  ;;  %v2881_v33 = vpop.f32.mrb[29].mxu0 }
 0xc9c   :  { %v1204_v34 = vpop.f32.mrb[30].mxu0  ;;  %v1240_v33 = vrot.slane %v3485_v21, %v1239_v28 }
 0xc9d   :  { %v1205_v36 = vadd.f32 %v1204_v34, %v1151_v31  ;;  %v2882_v37 = vpop.f32.mrb[31].mxu0  ;;  %v1208_v39 = vadd.f32 %v1202_v32, %v3449_v1 }
 0xc9f   :  { %v1210_v40 = vsel %vm150_vm1, %v1208_v39, 0.0  ;;  %v1209_v41 = vadd.f32 %v1205_v36, %v3451_v2  ;;  %v3694_v36 = vld [vmem:[%s3954_s5 + $0x8] sm:$0xff] }
 0xca0   :  { %1211 = vadd.xlane.f32.xlu0 %v1210_v40 }
 0xca1   :  { %v1213_v42 = vsel %vm150_vm1, %v1209_v41, 0.0 }
 0xca2   :  { %1214 = vadd.xlane.f32.xlu1 %v1213_v42 }
 0xcb3   :  { %3072 = vrot.lane.b32.xlu1 %v3071_v45, %s3321_s4 }
 0xd2d   :  { %v1212_v46 = vpop.xlane.xlu0 %1211 }
 0xd2e   :  { %v1217_v47 = vmul.f32 0.03125, %v1212_v46 }
 0xd2f   :  { %v1215_v48 = vpop.xlane.xlu1 %1214 }
 0xd30   :  { %v3669_v49 = vsub.f32 %v1208_v39, %v1217_v47  ;;  %v1218_v50 = vmul.f32 0.03125, %v1215_v48  ;;  %v1246_v39 = vrot.slane %v3694_v36, %v156_v20  ;;  %v1340_v20 = vsub.s32 3, %v3479_v19 }
 0xd32   :  { %v3671_v1 = vsub.f32 %v1209_v41, %v1218_v50  ;;  %v1221_v2 = vmul.f32 %v3669_v49, %v3669_v49 }
 0xd33   :  { %v3073_v59 = vpop.permute.xlu1 %3072 }
 0xd34   :  { %v1223_v51 = vsel %vm150_vm1, %v1221_v2, 0.0  ;;  %v1222_v27 = vmul.f32 %v3671_v1, %v3671_v1  ;;  %v3075_v60 = vunpack.i.h.bf16 %v3073_v59  ;;  %v3074_v35 = vunpack.i.l.bf16 %v3073_v59 }
 0xd35   :  { %1224 = vadd.xlane.f32.xlu0 %v1223_v51 }
 0xd36   :  { %v1226_v52 = vsel %vm150_vm1, %v1222_v27, 0.0  ;;  %v1333_v61 = vsel %vm150_vm1, %v1313_v57, %v3075_v60  ;;  %v1332_v62 = vsel %vm150_vm1, %v1312_v58, %v3074_v35 }
 0xd37   :  { %v1336_v63 = vpack.c.bf16 %v1333_v61, %v1332_v62 }
 0xd39   :  { %1227 = vadd.xlane.f32.xlu0 %v1226_v52  ;;  %2899 = vmatprep.mubr.msk.bf16.mxu0 %vm182_vm2, %v1336_v63 }
 0xd4f   :  { %3077 = vrot.lane.b32.xlu0 %v3076_v55, %s3321_s4 }
 0xdc2   :  { %v1225_v5 = vpop.xlane.xlu0 %1224 }
 0xdc3   :  { %v1229_v6 = vmul.f32 0.03125, %v1225_v5 }
 0xdc5   :  { %v1231_v7 = vadd.f32 1e-05, %v1229_v6 }
 0xdc6   :  { %v1228_v13 = vpop.xlane.xlu0 %1227 }
 0xdc7   :  { %3148 = vrsqrt.f32 %v1231_v7  ;;  %v1230_v14 = vmul.f32 0.03125, %v1228_v13 }
 0xdc9   :  { %v1232_v17 = vadd.f32 1e-05, %v1230_v14 }
 0xdca   :  { %v3078_v22 = vpop.permute.xlu0 %3077 }
 0xdcb   :  { %3150 = vrsqrt.f32 %v1232_v17  ;;  %v3080_v23 = vunpack.i.h.bf16 %v3078_v22  ;;  %v3079_v25 = vunpack.i.l.bf16 %v3078_v22 }
 0xdcd   :  { %v1335_v31 = vsel %vm150_vm1, %v1315_v15, %v3080_v23  ;;  %v1334_v29 = vsel %vm150_vm1, %v1314_v16, %v3079_v25 }
 0xdce   :  { %v1337_v32 = vpack.c.bf16 %v1335_v31, %v1334_v29 }
 0xdd0   :  { %2900 = vmatmul.mubr.msk.bf16.vlgmr.msra.gmra.mrb[32].mxu0 %vm182_vm2, %v1337_v32 }
 0xdd1   :  { %v3149_v34 = vpop.eup %3148  ;;  %2917 = vmatprep.mubr.msk.bf16.mxu0 %vm3320_vm0, %v3319_v0 }
 0xdd2   :  { %v1235_v37 = vmul.f32 %v3149_v34, %v3669_v49  ;;  %v1341_v49 = vrot.slane %v3485_v21, %v1340_v20 }
 0xdd4   :  { %v1241_v40 = vmul.f32 %v1240_v33, %v1235_v37 }
 0xdd5   :  { %v3151_v41 = vpop.eup %3150 }
 0xdd6   :  { %v1236_v42 = vmul.f32 %v3151_v41, %v3671_v1  ;;  %v3703_v44 = vadd.f32 %v1246_v39, %v1241_v40 }
 0xdd8   :  { %v1242_v43 = vmul.f32 %v1240_v33, %v1236_v42  ;;  %v1249_v46 = vadd.f32 %v3703_v44, %v3463_v8 }
 0xdda   :  { %v3705_v45 = vadd.f32 %v1246_v39, %v1242_v43 }
 0xddc   :  { %v1250_v47 = vadd.f32 %v3705_v45, %v3468_v9 }
 0xdde   :  { %v1251_v48 = vpack.c.bf16 %v1250_v47, %v1249_v46 }
 0xde0   :  { %2888 = vmatmul.mubr.msk.bf16.vlgmr.msra.gmra.mrb[40].mxu1 %vm150_vm1, %v1251_v48 }
 0xde1   :  { %2905 = vmatprep.mubr.msk.bf16.mxu1 %vm3320_vm0, %v3319_v0 }
 0xea3   :  { %v2901_v50 = vpop.f32.mrb[32].mxu0 }
 0xea4   :  { %v1415_v1 = vadd.f32 %v2901_v50, %v1341_v49  ;;  %v1406_v2 = vpop.f32.mrb[33].mxu0 }
 0xea5   :  { %v1407_v51 = vadd.f32 %v1406_v2, %v1341_v49  ;;  %v2902_v8 = vpop.f32.mrb[34].mxu0 }
 0xea6   :  { %v1418_v27 = vadd.f32 %v2902_v8, %v1341_v49  ;;  %v1409_v52 = vpop.f32.mrb[35].mxu0 }
 0xea7   :  { %v1410_v9 = vadd.f32 %v1409_v52, %v1341_v49 }
 0xea8   :  { %v3718_v53 = vpack.c.bf16 %v1418_v27, %v1415_v1 }
 0xea9   :  { %v3720_v54 = vpack.c.bf16 %v1410_v9, %v1407_v51 }
 0xeaa   :  { %v1477_v38 = vsel %vm236_vm3, %v3718_v53, 0 }
 0xeab   :  { %v1431_v30 = vsel %vm236_vm3, %v3720_v54, 0 }
 0xeac   :  { %2904 = vmatpush3.bf16.xpose.msra.mxu1 %v1431_v30 }
 0xead   :  { %2909 = vmatprep.subr.bf16.mxu1 %v3319_v0 }
 0xeb3   :  { %v1305_v26 = vpop.f32.mrb[40].mxu1 }
 0xeb4   :  { %v1306_v55 = vadd.f32 %v1305_v26, %v1255_v24  ;;  %v2889_v56 = vpop.f32.mrb[41].mxu1 }
 0xeb5   :  { %v1308_v57 = vpop.f32.mrb[42].mxu1 }
 0xeb6   :  { %v1421_v58 = vmul.f32 0.35355338, %v1306_v55  ;;  %v2890_v59 = vpop.f32.mrb[43].mxu1  ;;  %v1309_v35 = vadd.f32 %v1308_v57, %v1255_v24 }
 0xeb8   :  { %v3729_v60 = vpack.c.bf16 %v1421_v58, %v1421_v58  ;;  %v1422_v21 = vmul.f32 0.35355338, %v1309_v35 }
 0xeba   :  { %2906 = vmatmul.mubr.msk.bf16.vlgmr.msra.gmra.mrb[44].mxu1 %vm236_vm3, %v3729_v60  ;;  %v3738_v61 = vpack.c.bf16 %v1422_v21, %v1422_v21 }
 0xebb   :  { %2910 = vmatpush3.bf16.xpose.msra.mxu1 %v1477_v38  ;;  %2911 = vmatprep.mubr.msk.bf16.mxu1 %vm3320_vm0, %v3319_v0 }
 0xebc   :  { %2921 = vmatprep.subr.bf16.mxu1 %v3319_v0 }
 0xec2   :  { %2912 = vmatmul.mubr.msk.bf16.vlgmr.msra.gmra.mrb[48].mxu1 %vm236_vm3, %v3738_v61 }
 0xec3   :  { %2923 = vmatprep.mubr.msk.bf16.mxu1 %vm3320_vm0, %v3319_v0 }
 0xf8d   :  { %v1467_v62 = vpop.f32.mrb[44].mxu1 }
 0xf8e   :  { %v2907_v63 = vpop.f32.mrb[45].mxu1  ;;  %v1519_v3 = vsel %vm1141_vm5, %v1467_v62, -inf }
 0xf8f   :  { %1520 = vmax.xlane.f32.xlu1 %v1519_v3  ;;  %v1470_v4 = vpop.f32.mrb[46].mxu1 }
 0xf90   :  { %v2908_v5 = vpop.f32.mrb[47].mxu1 }
 0xf95   :  { %v1513_v6 = vpop.f32.mrb[48].mxu1 }
 0xf96   :  { %v2913_v7 = vpop.f32.mrb[49].mxu1  ;;  %v1522_v10 = vsel %vm1141_vm5, %v1513_v6, -inf }
 0xf97   :  { %1523 = vmax.xlane.f32.xlu0 %v1522_v10  ;;  %v1516_v11 = vpop.f32.mrb[50].mxu1 }
 0xf98   :  { %v2914_v13 = vpop.f32.mrb[51].mxu1 }
 0xfa0   :  { %1544 = vrot.lane.b32.xlu1 %v3720_v54, %s3322_s29 }
0x101c   :  { %v1521_v14 = vpop.xlane.xlu1 %1520 }
0x101d   :  { %v1525_v15 = vsub.f32 %v1467_v62, %v1521_v14 }
0x101f   :  { %v1527_v16 = vmul.f32 1.442695, %v1525_v15 }
0x1020   :  { %v1545_v17 = vpop.permute.xlu1 %1544 }
0x1021   :  { %3152 = vpow2.f32 %v1527_v16  ;;  %2916 = vmatpush3.bf16.msra.mxu0 %v1545_v17 }
0x1022   :  { %2927 = vmatprep.subr.bf16.mxu0 %v3319_v0 }
0x1024   :  { %v1524_v22 = vpop.xlane.xlu0 %1523 }
0x1025   :  { %v1526_v23 = vsub.f32 %v1513_v6, %v1524_v22 }
0x1027   :  { %v1529_v25 = vmul.f32 1.442695, %v1526_v23 }
0x1029   :  { %3154 = vpow2.f32 %v1529_v25 }
0x102b   :  { %v3153_v28 = vpop.eup %3152 }
0x102c   :  { %v1531_v31 = vsel %vm1141_vm5, %v3153_v28, 0.0 }
0x102d   :  { %1532 = vadd.xlane.f32.xlu1 %v1531_v31 }
0x1033   :  { %v3155_v29 = vpop.eup %3154 }
0x1034   :  { %v1534_v32 = vsel %vm1141_vm5, %v3155_v29, 0.0 }
0x1035   :  { %1535 = vadd.xlane.f32.xlu0 %v1534_v32 }
0x103e   :  { %1640 = vrot.lane.b32.xlu1 %v3720_v54, %s3324_s7 }
0x1042   :  { %1691 = vrot.lane.b32.xlu1 %v3718_v53, %s3324_s7 }
0x1046   :  { %1689 = vrot.lane.b32.xlu1 %v3738_v61, %s3324_s7 }
0x104b   :  { %1591 = vrot.lane.b32.xlu0 %v3718_v53, %s3322_s29 }
0x104f   :  { %1638 = vrot.lane.b32.xlu0 %v3729_v60, %s3324_s7 }
0x10ba   :  { %v1533_v33 = vpop.xlane.xlu1 %1532 }
0x10bb   :  { %3156 = vrcp.f32 %v1533_v33 }
0x10be   :  { %v1641_v41 = vpop.permute.xlu1 %1640 }
0x10bf   :  { %v1646_v43 = vsel %vm236_vm3, %v1641_v41, 0 }
0x10c2   :  { %v1536_v34 = vpop.xlane.xlu0 %1535  ;;  %v1692_v48 = vpop.permute.xlu1 %1691 }
0x10c3   :  { %3158 = vrcp.f32 %v1536_v34  ;;  %v1697_v1 = vsel %vm236_vm3, %v1692_v48, 0 }
0x10c5   :  { %v3157_v37 = vpop.eup %3156 }
0x10c6   :  { %v1539_v39 = vmul.f32 %v3157_v37, %v3153_v28  ;;  %v1592_v40 = vpop.permute.xlu0 %1591  ;;  %v1690_v2 = vpop.permute.xlu1 %1689 }
0x10c7   :  { %2922 = vmatpush3.bf16.msra.mxu1 %v1592_v40 }
0x10c8   :  { %v1541_v42 = vpack.c.bf16 %v1539_v39, %v1539_v39  ;;  %2933 = vmatprep.subr.bf16.mxu1 %v3319_v0 }
0x10ca   :  { %2918 = vmatmul.mubr.msk.bf16.vlgmr.msra.gmra.mrb[36].mxu0 %vm1141_vm5, %v1541_v42  ;;  %v1639_v50 = vpop.permute.xlu0 %1638 }
0x10cb   :  { %2928 = vmatpush3.bf16.xpose.msra.mxu0 %v1646_v43  ;;  %2929 = vmatprep.mubr.msk.bf16.mxu0 %vm3320_vm0, %v3319_v0 }
0x10cc   :  { %2939 = vmatprep.subr.bf16.mxu0 %v3319_v0 }
0x10cd   :  { %v3159_v46 = vpop.eup %3158 }
0x10ce   :  { %v1540_v47 = vmul.f32 %v3159_v46, %v3155_v29 }
0x10d0   :  { %v1542_v49 = vpack.c.bf16 %v1540_v47, %v1540_v47 }
0x10d2   :  { %2924 = vmatmul.mubr.msk.bf16.vlgmr.msra.gmra.mrb[52].mxu1 %vm1141_vm5, %v1542_v49  ;;  %2930 = vmatmul.mubr.msk.bf16.vlgmr.msra.gmra.mrb[40].mxu0 %vm236_vm3, %v1639_v50 }
0x10d3   :  { %2934 = vmatpush3.bf16.xpose.msra.mxu1 %v1697_v1  ;;  %2935 = vmatprep.mubr.msk.bf16.mxu1 %vm3320_vm0, %v3319_v0 }
0x10d4   :  { %2945 = vmatprep.subr.bf16.mxu1 %v3319_v0  ;;  %2941 = vmatprep.mubr.msk.bf16.mxu0 %vm3320_vm0, %v3319_v0 }
0x10da   :  { %2936 = vmatmul.mubr.msk.bf16.vlgmr.msra.gmra.mrb[56].mxu1 %vm236_vm3, %v1690_v2 }
0x10db   :  { %2947 = vmatprep.mubr.msk.bf16.mxu1 %vm3320_vm0, %v3319_v0 }
0x119d   :  { %v3778_v51 = vpop.f32.mrb[36].mxu0 }
0x119e   :  { %v2919_v8 = vpop.f32.mrb[37].mxu0 }
0x119f   :  { %v1587_v27 = vpop.f32.mrb[38].mxu0 }
0x11a0   :  { %v2920_v52 = vpop.f32.mrb[39].mxu0 }
0x11a5   :  { %v3780_v9 = vpop.f32.mrb[52].mxu1  ;;  %v1682_v30 = vpop.f32.mrb[40].mxu0 }
0x11a6   :  { %v2925_v24 = vpop.f32.mrb[53].mxu1  ;;  %v2931_v26 = vpop.f32.mrb[41].mxu0  ;;  %v1739_v55 = vsel %vm1141_vm5, %v1682_v30, -inf }
0x11a7   :  { %1740 = vmax.xlane.f32.xlu0 %v1739_v55  ;;  %v1634_v56 = vpop.f32.mrb[54].mxu1  ;;  %v1685_v57 = vpop.f32.mrb[42].mxu0 }
0x11a8   :  { %v2926_v58 = vpop.f32.mrb[55].mxu1  ;;  %v2932_v59 = vpop.f32.mrb[43].mxu0 }
0x11ad   :  { %v1733_v35 = vpop.f32.mrb[56].mxu1 }
0x11ae   :  { %v2937_v38 = vpop.f32.mrb[57].mxu1  ;;  %v1742_v21 = vsel %vm1141_vm5, %v1733_v35, -inf }
0x11af   :  { %1743 = vmax.xlane.f32.xlu1 %v1742_v21  ;;  %v1736_v62 = vpop.f32.mrb[58].mxu1 }
0x11b0   :  { %v2938_v63 = vpop.f32.mrb[59].mxu1 }
0x11c0   :  { %1763 = vrot.lane.b32.xlu1 %v3720_v54, %s3323_s30 }
0x11c4   :  { %1857 = vrot.lane.b32.xlu1 %v3720_v54, %s3327_s0 }
0x11c8   :  { %1907 = vrot.lane.b32.xlu1 %v3718_v53, %s3327_s0 }
0x11cc   :  { %1905 = vrot.lane.b32.xlu1 %v3738_v61, %s3327_s0 }
0x1234   :  { %v1741_v3 = vpop.xlane.xlu0 %1740 }
0x1235   :  { %v1745_v4 = vsub.f32 %v1682_v30, %v1741_v3 }
0x1237   :  { %v1747_v5 = vmul.f32 1.442695, %v1745_v4 }
0x1239   :  { %3160 = vpow2.f32 %v1747_v5 }
0x123c   :  { %v1744_v6 = vpop.xlane.xlu1 %1743 }
0x123d   :  { %v1746_v7 = vsub.f32 %v1733_v35, %v1744_v6 }
0x123f   :  { %v1749_v10 = vmul.f32 1.442695, %v1746_v7 }
0x1240   :  { %v1764_v11 = vpop.permute.xlu1 %1763 }
0x1241   :  { %3162 = vpow2.f32 %v1749_v10  ;;  %2940 = vmatpush3.bf16.msra.mxu0 %v1764_v11 }
0x1242   :  { %2951 = vmatprep.subr.bf16.mxu0 %v3319_v0 }
0x1243   :  { %v3161_v13 = vpop.eup %3160 }
0x1244   :  { %v1751_v14 = vsel %vm1141_vm5, %v3161_v13, 0.0  ;;  %v1858_v31 = vpop.permute.xlu1 %1857 }
0x1245   :  { %1752 = vadd.xlane.f32.xlu0 %v1751_v14  ;;  %v1863_v32 = vsel %vm236_vm3, %v1858_v31, 0 }
0x1248   :  { %v1908_v37 = vpop.permute.xlu1 %1907 }
0x1249   :  { %v1913_v41 = vsel %vm236_vm3, %v1908_v37, 0 }
0x124b   :  { %v3163_v15 = vpop.eup %3162 }
0x124c   :  { %v1754_v16 = vsel %vm1141_vm5, %v3163_v15, 0.0  ;;  %v1906_v42 = vpop.permute.xlu1 %1905 }
0x124d   :  { %1755 = vadd.xlane.f32.xlu0 %v1754_v16 }
0x1263   :  { %1809 = vrot.lane.b32.xlu0 %v3718_v53, %s3323_s30 }
0x1267   :  { %1855 = vrot.lane.b32.xlu0 %v3729_v60, %s3327_s0 }
0x12d2   :  { %v1753_v17 = vpop.xlane.xlu0 %1752 }
0x12d3   :  { %3164 = vrcp.f32 %v1753_v17 }
0x12da   :  { %v1756_v22 = vpop.xlane.xlu0 %1755 }
0x12db   :  { %3166 = vrcp.f32 %v1756_v22 }
0x12dd   :  { %v3165_v23 = vpop.eup %3164 }
0x12de   :  { %v1759_v25 = vmul.f32 %v3165_v23, %v3161_v13  ;;  %v1810_v28 = vpop.permute.xlu0 %1809 }
0x12df   :  { %2946 = vmatpush3.bf16.msra.mxu1 %v1810_v28 }
0x12e0   :  { %v1761_v29 = vpack.c.bf16 %v1759_v25, %v1759_v25  ;;  %2957 = vmatprep.subr.bf16.mxu1 %v3319_v0 }
0x12e2   :  { %2942 = vmatmul.mubr.msk.bf16.vlgmr.msra.gmra.mrb[44].mxu0 %vm1141_vm5, %v1761_v29  ;;  %v1856_v40 = vpop.permute.xlu0 %1855 }
0x12e3   :  { %2952 = vmatpush3.bf16.xpose.msra.mxu0 %v1863_v32  ;;  %2953 = vmatprep.mubr.msk.bf16.mxu0 %vm3320_vm0, %v3319_v0 }
0x12e4   :  { %2963 = vmatprep.subr.bf16.mxu0 %v3319_v0 }
0x12e5   :  { %v3167_v33 = vpop.eup %3166 }
0x12e6   :  { %v1760_v34 = vmul.f32 %v3167_v33, %v3163_v15 }
0x12e8   :  { %v1762_v39 = vpack.c.bf16 %v1760_v34, %v1760_v34 }
0x12ea   :  { %2948 = vmatmul.mubr.msk.bf16.vlgmr.msra.gmra.mrb[60].mxu1 %vm1141_vm5, %v1762_v39  ;;  %2954 = vmatmul.mubr.msk.bf16.vlgmr.msra.gmra.mrb[48].mxu0 %vm236_vm3, %v1856_v40 }
0x12eb   :  { %2958 = vmatpush3.bf16.xpose.msra.mxu1 %v1913_v41  ;;  %2959 = vmatprep.mubr.msk.bf16.mxu1 %vm3320_vm0, %v3319_v0 }
0x12ec   :  { %2969 = vmatprep.subr.bf16.mxu1 %v3319_v0  ;;  %2965 = vmatprep.mubr.msk.bf16.mxu0 %vm3320_vm0, %v3319_v0 }
0x12f2   :  { %2960 = vmatmul.mubr.msk.bf16.vlgmr.msra.gmra.mrb[64].mxu1 %vm236_vm3, %v1906_v42 }
0x12f3   :  { %2971 = vmatprep.mubr.msk.bf16.mxu1 %vm3320_vm0, %v3319_v0 }
0x13b5   :  { %v3816_v43 = vpop.f32.mrb[44].mxu0 }
0x13b6   :  { %v2943_v46 = vpop.f32.mrb[45].mxu0 }
0x13b7   :  { %v1806_v47 = vpop.f32.mrb[46].mxu0 }
0x13b8   :  { %v2944_v48 = vpop.f32.mrb[47].mxu0 }
0x13bd   :  { %v3818_v49 = vpop.f32.mrb[60].mxu1  ;;  %v1899_v50 = vpop.f32.mrb[48].mxu0 }
0x13be   :  { %v3081_v1 = vpack.i.bf16 %v3818_v49, %v3816_v43  ;;  %v2949_v2 = vpop.f32.mrb[61].mxu1  ;;  %v2955_v8 = vpop.f32.mrb[49].mxu0  ;;  %v1955_v27 = vsel %vm1141_vm5, %v1899_v50, -inf }
0x13bf   :  { %1956 = vmax.xlane.f32.xlu0 %v1955_v27  ;;  %v1852_v52 = vpop.f32.mrb[62].mxu1  ;;  %v1902_v30 = vpop.f32.mrb[50].mxu0 }
0x13c0   :  { %v2950_v24 = vpop.f32.mrb[63].mxu1  ;;  %v2956_v26 = vpop.f32.mrb[51].mxu0 }
0x13c5   :  { %v1949_v55 = vpop.f32.mrb[64].mxu1 }
0x13c6   :  { %v2961_v56 = vpop.f32.mrb[65].mxu1  ;;  %v1958_v57 = vsel %vm1141_vm5, %v1949_v55, -inf }
0x13c7   :  { %1959 = vmax.xlane.f32.xlu1 %v1958_v57  ;;  %v1952_v58 = vpop.f32.mrb[66].mxu1 }
0x13c8   :  { %v2962_v59 = vpop.f32.mrb[67].mxu1 }
0x13d8   :  { %1979 = vrot.lane.b32.xlu1 %v3720_v54, %s3326_s11 }
0x13dc   :  { %2073 = vrot.lane.b32.xlu1 %v3720_v54, %s3330_s13 }
0x13e0   :  { %2123 = vrot.lane.b32.xlu1 %v3718_v53, %s3330_s13 }
0x13e4   :  { %2121 = vrot.lane.b32.xlu1 %v3738_v61, %s3330_s13 }
0x144c   :  { %v1957_v35 = vpop.xlane.xlu0 %1956 }
0x144d   :  { %v1961_v38 = vsub.f32 %v1899_v50, %v1957_v35 }
0x144f   :  { %v1963_v21 = vmul.f32 1.442695, %v1961_v38 }
0x1451   :  { %3168 = vpow2.f32 %v1963_v21 }
0x1454   :  { %v1960_v62 = vpop.xlane.xlu1 %1959 }
0x1455   :  { %v1962_v63 = vsub.f32 %v1949_v55, %v1960_v62 }
0x1457   :  { %v1965_v3 = vmul.f32 1.442695, %v1962_v63 }
0x1458   :  { %v1980_v4 = vpop.permute.xlu1 %1979 }
0x1459   :  { %3170 = vpow2.f32 %v1965_v3  ;;  %2964 = vmatpush3.bf16.msra.mxu0 %v1980_v4 }
0x145a   :  { %2975 = vmatprep.subr.bf16.mxu0 %v3319_v0 }
0x145b   :  { %v3169_v5 = vpop.eup %3168 }
0x145c   :  { %v1967_v6 = vsel %vm1141_vm5, %v3169_v5, 0.0  ;;  %v2074_v16 = vpop.permute.xlu1 %2073 }
0x145d   :  { %1968 = vadd.xlane.f32.xlu0 %v1967_v6  ;;  %v2079_v22 = vsel %vm236_vm3, %v2074_v16, 0 }
0x1460   :  { %v2124_v25 = vpop.permute.xlu1 %2123 }
0x1461   :  { %v2129_v29 = vsel %vm236_vm3, %v2124_v25, 0 }
0x1463   :  { %v3171_v7 = vpop.eup %3170 }
0x1464   :  { %v1970_v10 = vsel %vm1141_vm5, %v3171_v7, 0.0  ;;  %v2122_v32 = vpop.permute.xlu1 %2121 }
0x1465   :  { %1971 = vadd.xlane.f32.xlu0 %v1970_v10 }
0x147b   :  { %2025 = vrot.lane.b32.xlu0 %v3718_v53, %s3326_s11 }
0x147f   :  { %2071 = vrot.lane.b32.xlu0 %v3729_v60, %s3330_s13 }
0x14ea   :  { %v1969_v61 = vpop.xlane.xlu0 %1968 }
0x14eb   :  { %3172 = vrcp.f32 %v1969_v61 }
0x14f2   :  { %v1972_v11 = vpop.xlane.xlu0 %1971 }
0x14f3   :  { %3174 = vrcp.f32 %v1972_v11  ;;  %v3109_v11 = vld [vmem:[#allocation8 + $0x88] sm:$0xff]  }
0x14f5   :  { %v3173_v13 = vpop.eup %3172 }
0x14f6   :  { %v1975_v14 = vmul.f32 %v3173_v13, %v3169_v5  ;;  %v2026_v15 = vpop.permute.xlu0 %2025 }
0x14f7   :  { %2970 = vmatpush3.bf16.msra.mxu1 %v2026_v15 }
0x14f8   :  { %v1977_v17 = vpack.c.bf16 %v1975_v14, %v1975_v14  ;;  %2981 = vmatprep.subr.bf16.mxu1 %v3319_v0 }
0x14fa   :  { %2966 = vmatmul.mubr.msk.bf16.vlgmr.msra.gmra.mrb[52].mxu0 %vm1141_vm5, %v1977_v17  ;;  %v2072_v31 = vpop.permute.xlu0 %2071 }
0x14fb   :  { %2976 = vmatpush3.bf16.xpose.msra.mxu0 %v2079_v22  ;;  %2977 = vmatprep.mubr.msk.bf16.mxu0 %vm3320_vm0, %v3319_v0 }
0x14fc   :  { %2987 = vmatprep.subr.bf16.mxu0 %v3319_v0 }
0x14fd   :  { %v3175_v60 = vpop.eup %3174 }
0x14fe   :  { %v1976_v23 = vmul.f32 %v3175_v60, %v3171_v7 }
0x1500   :  { %v1978_v28 = vpack.c.bf16 %v1976_v23, %v1976_v23 }
0x1502   :  { %2972 = vmatmul.mubr.msk.bf16.vlgmr.msra.gmra.mrb[68].mxu1 %vm1141_vm5, %v1978_v28  ;;  %2978 = vmatmul.mubr.msk.bf16.vlgmr.msra.gmra.mrb[56].mxu0 %vm236_vm3, %v2072_v31 }
0x1503   :  { %2982 = vmatpush3.bf16.xpose.msra.mxu1 %v2129_v29  ;;  %2983 = vmatprep.mubr.msk.bf16.mxu1 %vm3320_vm0, %v3319_v0 }
0x1504   :  { %2993 = vmatprep.subr.bf16.mxu1 %v3319_v0  ;;  %2989 = vmatprep.mubr.msk.bf16.mxu0 %vm3320_vm0, %v3319_v0 }
0x150a   :  { %2984 = vmatmul.mubr.msk.bf16.vlgmr.msra.gmra.mrb[72].mxu1 %vm236_vm3, %v2122_v32 }
0x150b   :  { %2995 = vmatprep.mubr.msk.bf16.mxu1 %vm3320_vm0, %v3319_v0 }
0x15cd   :  { %v2019_v33 = vpop.f32.mrb[52].mxu0 }
0x15ce   :  { %v2967_v34 = vpop.f32.mrb[53].mxu0 }
0x15cf   :  { %v2022_v37 = vpop.f32.mrb[54].mxu0 }
0x15d0   :  { %v2968_v39 = vpop.f32.mrb[55].mxu0 }
0x15d5   :  { %v2065_v40 = vpop.f32.mrb[68].mxu1  ;;  %v2115_v41 = vpop.f32.mrb[56].mxu0 }
0x15d6   :  { %v3086_v42 = vpack.i.bf16 %v2065_v40, %v2019_v33  ;;  %v2973_v46 = vpop.f32.mrb[69].mxu1  ;;  %v2979_v47 = vpop.f32.mrb[57].mxu0  ;;  %v2171_v48 = vsel %vm1141_vm5, %v2115_v41, -inf }
0x15d7   :  { %2172 = vmax.xlane.f32.xlu0 %v2171_v48  ;;  %v2068_v50 = vpop.f32.mrb[70].mxu1  ;;  %v2118_v2 = vpop.f32.mrb[58].mxu0 }
0x15d8   :  { %v2974_v8 = vpop.f32.mrb[71].mxu1  ;;  %v2980_v27 = vpop.f32.mrb[59].mxu0 }
0x15dd   :  { %v2165_v52 = vpop.f32.mrb[72].mxu1 }
0x15de   :  { %v2985_v30 = vpop.f32.mrb[73].mxu1  ;;  %v2174_v24 = vsel %vm1141_vm5, %v2165_v52, -inf }
0x15df   :  { %2175 = vmax.xlane.f32.xlu1 %v2174_v24  ;;  %v2168_v26 = vpop.f32.mrb[74].mxu1 }
0x15e0   :  { %v2986_v55 = vpop.f32.mrb[75].mxu1 }
0x15f0   :  { %2195 = vrot.lane.b32.xlu1 %v3720_v54, %s3329_s12 }
0x15f4   :  { %3082 = vrot.lane.b32.xlu1 %v3081_v1, %s3314_s10 }
0x15f8   :  { %3087 = vrot.lane.b32.xlu1 %v3086_v42, %s3332_s15 }
0x1664   :  { %v2173_v56 = vpop.xlane.xlu0 %2172 }
0x1665   :  { %v2177_v57 = vsub.f32 %v2115_v41, %v2173_v56 }
0x1667   :  { %v2179_v58 = vmul.f32 1.442695, %v2177_v57 }
0x1669   :  { %3176 = vpow2.f32 %v2179_v58 }
0x166c   :  { %v2176_v59 = vpop.xlane.xlu1 %2175 }
0x166d   :  { %v2178_v35 = vsub.f32 %v2165_v52, %v2176_v59 }
0x166f   :  { %v2181_v38 = vmul.f32 1.442695, %v2178_v35 }
0x1670   :  { %v2196_v21 = vpop.permute.xlu1 %2195 }
0x1671   :  { %3178 = vpow2.f32 %v2181_v38  ;;  %2988 = vmatpush3.bf16.msra.mxu0 %v2196_v21 }
0x1672   :  { %2999 = vmatprep.subr.bf16.mxu0 %v3319_v0 }
0x1673   :  { %v3177_v54 = vpop.eup %3176 }
0x1674   :  { %v2183_v62 = vsel %vm1141_vm5, %v3177_v54, 0.0  ;;  %v3083_v28 = vpop.permute.xlu1 %3082 }
0x1675   :  { %2184 = vadd.xlane.f32.xlu0 %v2183_v62  ;;  %v3085_v29 = vunpack.i.h.bf16 %v3083_v28  ;;  %v3084_v32 = vunpack.i.l.bf16 %v3083_v28 }
0x1677   :  { %v2312_v39 = vsel %vm236_vm3, %v3780_v9, %v3085_v29  ;;  %v2311_v40 = vsel %vm236_vm3, %v3778_v51, %v3084_v32  ;;  %v2320_v9 = vsub.s32 4, %v3479_v19  ;;  %v3895_v51 = vld [vmem:[%s3954_s5] sm:$0xff]  ;;  %v2421_v32 = vsub.s32 5, %v3479_v19  ;;  %s3334_s5 = smov [#allocation10]  }
0x1678   :  { %v3088_v31 = vpop.permute.xlu1 %3087  ;;  %v3114_v29 = vld [vmem:[#allocation8 + $0xd0] sm:$0xff]   ;;  %s2601_s3 = sshll.u32 %s3334_s5, 4  ;;  %s2602_s3 = int_to_ptr.vmem [resolvable:$true] %s2601_s3 }
0x1679   :  { %v3090_v33 = vunpack.i.h.bf16 %v3088_v31  ;;  %v3089_v34 = vunpack.i.l.bf16 %v3088_v31  ;;  %v2321_v8 = vrot.slane %v3895_v51, %v2320_v9  ;;  %s3281_s2 = scalar_lea.vmem %s2602_s3, 256  ;;  %p3286_p5 = scmp.lt.s32.totalorder %s2602_s3, %s2602_s3 }
0x167a   :  { %p3282_p4 = scmp.ne.s32.totalorder %s2602_s3, %s3281_s2  ;;  %p3287_p6 = scmp.lt.s32.totalorder %s3281_s2, %s3281_s2 }
0x167b   :  { %v3179_v43 = vpop.eup %3178  ;;  %v2313_v46 = vsel %vm1141_vm5, %v2311_v40, %v3089_v34  ;;  %v2314_v47 = vsel %vm1141_vm5, %v2312_v39, %v3090_v33  ;;  %v2422_v33 = vrot.slane %v3895_v51, %v2421_v32 }
0x167c   :  { %v2186_v49 = vsel %vm1141_vm5, %v3179_v43, 0.0  ;;  %p3288_p7 = por %p3287_p6, %p3286_p5 }
0x167d   :  { %2187 = vadd.xlane.f32.xlu0 %v2186_v49 }
0x167e   :  { %p3289_p8 = pnand %p3288_p7, %p3282_p4 }
0x1693   :  { %2241 = vrot.lane.b32.xlu0 %v3718_v53, %s3329_s12  ;;  %v3108_v53 = vld [vmem:[#allocation8 + $0x80] sm:$0xff]  }
0x1702   :  { %v2185_v1 = vpop.xlane.xlu0 %2184 }
0x1703   :  { %3180 = vrcp.f32 %v2185_v1 }
0x170a   :  { %v2188_v63 = vpop.xlane.xlu0 %2187 }
0x170b   :  { %3182 = vrcp.f32 %v2188_v63 }
0x170d   :  { %v3181_v3 = vpop.eup %3180 }
0x170e   :  { %v2191_v4 = vmul.f32 %v3181_v3, %v3177_v54  ;;  %v2242_v5 = vpop.permute.xlu0 %2241  ;;  %v3110_v3 = vld [vmem:[#allocation8 + $0xa0] sm:$0xff]  }
0x170f   :  { %2994 = vmatpush3.bf16.msra.mxu1 %v2242_v5  ;;  %v3113_v5 = vld [vmem:[#allocation8 + $0xc8] sm:$0xff]  }
0x1710   :  { %v2193_v6 = vpack.c.bf16 %v2191_v4, %v2191_v4  ;;  %3007 = vmatprep.subr.bf16.mxu1 %v3319_v0  ;;  %v3112_v4 = vld [vmem:[#allocation8 + $0xc0] sm:$0xff]  }
0x1712   :  { %2990 = vmatmul.mubr.msk.bf16.vlgmr.msra.gmra.mrb[60].mxu0 %vm1141_vm5, %v2193_v6 }
0x1713   :  { %3003 = vmatprep.mubr.msk.bf16.mxu0 %vm3320_vm0, %v3319_v0  ;;  %3000 = vmatpush3.bf16.msra.mxu0 %v3108_v53 }
0x1714   :  { %3001 = vmatprep.subr.bf16.mxu0 %v3319_v0 }
0x1715   :  { %v3183_v7 = vpop.eup %3182 }
0x1716   :  { %v2192_v10 = vmul.f32 %v3183_v7, %v3179_v43 }
0x1717   :  { %3002 = vmatpush3.bf16.msra.mxu0 %v3109_v11 }
0x1718   :  { %v2194_v61 = vpack.c.bf16 %v2192_v10, %v2192_v10  ;;  %3015 = vmatprep.subr.bf16.mxu0 %v3319_v0 }
0x171a   :  { %2996 = vmatmul.mubr.msk.bf16.vlgmr.msra.gmra.mrb[76].mxu1 %vm1141_vm5, %v2194_v61 }
0x171b   :  { %3011 = vmatprep.mubr.msk.bf16.mxu1 %vm3320_vm0, %v3319_v0  ;;  %3008 = vmatpush3.bf16.msra.mxu1 %v3110_v3 }
0x171c   :  { %3009 = vmatprep.subr.bf16.mxu1 %v3319_v0 }
0x17e5   :  { %v2235_v13 = vpop.f32.mrb[60].mxu0 }
0x17e6   :  { %v2991_v14 = vpop.f32.mrb[61].mxu0 }
0x17e7   :  { %v2238_v15 = vpop.f32.mrb[62].mxu0 }
0x17e8   :  { %v2992_v16 = vpop.f32.mrb[63].mxu0 }
0x17ed   :  { %v2281_v17 = vpop.f32.mrb[76].mxu1 }
0x17ee   :  { %v3091_v22 = vpack.i.bf16 %v2281_v17, %v2235_v13  ;;  %v2997_v60 = vpop.f32.mrb[77].mxu1  ;;  %v2409_v13 = vrot.slane %v3694_v36, %v1150_v18  ;;  %v2415_v17 = vrot.slane %v3694_v36, %v1254_v12  ;;  %v3115_v18 = vld [vmem:[#allocation8 + $0xd8] sm:$0xff]  }
0x17ef   :  { %v2284_v23 = vpop.f32.mrb[78].mxu1 }
0x17f0   :  { %3092 = vrot.lane.b32.xlu0 %v3091_v22, %s3333_s16  ;;  %v2998_v25 = vpop.f32.mrb[79].mxu1 }
0x1862   :  { %v3093_v37 = vpop.permute.xlu0 %3092 }
0x1863   :  { %v3095_v41 = vunpack.i.h.bf16 %v3093_v37  ;;  %v3094_v42 = vunpack.i.l.bf16 %v3093_v37 }
0x1865   :  { %v2316_v48 = vsel %vm1144_vm6, %v2314_v47, %v3095_v41  ;;  %v2315_v50 = vsel %vm1144_vm6, %v2313_v46, %v3094_v42 }
0x1866   :  { %v2317_v2 = vpack.c.bf16 %v2316_v48, %v2315_v50  ;;  %v2484_v48 = vsub.s32 6, %v3479_v19 }
0x1868   :  { %3004 = vmatmul.mubr.msk.bf16.vlgmr.msra.gmra.mrb[64].mxu0 %vm150_vm1, %v2317_v2 }
0x1869   :  { %3023 = vmatprep.mubr.msk.bf16.mxu0 %vm3320_vm0, %v3319_v0  ;;  %3016 = vmatpush3.bf16.msra.mxu0 %v3112_v4  ;;  %v2585_v4 = vrot.slane %v3694_v36, %v1340_v20 }
0x186a   :  { %3017 = vmatprep.subr.bf16.mxu0 %v3319_v0 }
0x186d   :  { %3018 = vmatpush3.bf16.msra.mxu0 %v3113_v5 }
0x186e   :  { %3019 = vmatprep.subr.bf16.mxu0 %v3319_v0 }
0x1871   :  { %3020 = vmatpush3.bf16.msra.mxu0 %v3114_v29 }
0x1872   :  { %3021 = vmatprep.subr.bf16.mxu0 %v3319_v0  ;;  %v2485_v0 = vrot.slane %v3895_v51, %v2484_v48 }
0x1875   :  { %3022 = vmatpush3.bf16.msra.mxu0 %v3115_v18 }
0x193b   :  { %v2371_v27 = vpop.f32.mrb[64].mxu0 }
0x193c   :  { %v2372_v52 = vadd.f32 %v2371_v27, %v2321_v8  ;;  %v3005_v30 = vpop.f32.mrb[65].mxu0 }
0x193d   :  { %v2374_v24 = vpop.f32.mrb[66].mxu0 }
0x193e   :  { %v2375_v26 = vadd.f32 %v2374_v24, %v2321_v8  ;;  %v3006_v55 = vpop.f32.mrb[67].mxu0  ;;  %v2378_v56 = vadd.f32 %v2372_v52, %v3703_v44 }
0x1940   :  { %v2380_v57 = vsel %vm150_vm1, %v2378_v56, 0.0  ;;  %v2379_v58 = vadd.f32 %v2375_v26, %v3705_v45  ;;  %v3111_v45 = vld [vmem:[#allocation8 + $0xa8] sm:$0xff]  }
0x1941   :  { %2381 = vadd.xlane.f32.xlu1 %v2380_v57  ;;  %3010 = vmatpush3.bf16.msra.mxu1 %v3111_v45 }
0x1942   :  { %v2383_v59 = vsel %vm150_vm1, %v2379_v58, 0.0 }
0x1943   :  { %2384 = vadd.xlane.f32.xlu0 %v2383_v59 }
0x19ce   :  { %v2382_v35 = vpop.xlane.xlu1 %2381 }
0x19cf   :  { %v2386_v38 = vmul.f32 0.03125, %v2382_v35 }
0x19d0   :  { %v2385_v21 = vpop.xlane.xlu0 %2384 }
0x19d1   :  { %v2388_v54 = vsub.f32 %v2378_v56, %v2386_v38  ;;  %v2387_v62 = vmul.f32 0.03125, %v2385_v21 }
0x19d3   :  { %v2389_v43 = vsub.f32 %v2379_v58, %v2387_v62  ;;  %v2390_v49 = vmul.f32 %v2388_v54, %v2388_v54 }
0x19d5   :  { %v2392_v1 = vsel %vm150_vm1, %v2390_v49, 0.0  ;;  %v2391_v63 = vmul.f32 %v2389_v43, %v2389_v43 }
0x19d6   :  { %2393 = vadd.xlane.f32.xlu0 %v2392_v1 }
0x19d7   :  { %v2395_v44 = vsel %vm150_vm1, %v2391_v63, 0.0 }
0x19d8   :  { %2396 = vadd.xlane.f32.xlu1 %v2395_v44 }
0x1a63   :  { %v2394_v6 = vpop.xlane.xlu0 %2393 }
0x1a64   :  { %v2398_v7 = vmul.f32 0.03125, %v2394_v6  ;;  %v2591_v6 = vrot.slane %v3694_v36, %v2320_v9 }
0x1a65   :  { %v2397_v10 = vpop.xlane.xlu1 %2396 }
0x1a66   :  { %v2400_v61 = vadd.f32 1e-05, %v2398_v7  ;;  %v2399_v53 = vmul.f32 0.03125, %v2397_v10 }
0x1a68   :  { %3184 = vrsqrt.f32 %v2400_v61  ;;  %v2401_v11 = vadd.f32 1e-05, %v2399_v53 }
0x1a6a   :  { %3186 = vrsqrt.f32 %v2401_v11 }
0x1a72   :  { %v3185_v14 = vpop.eup %3184 }
0x1a73   :  { %v2404_v15 = vmul.f32 %v3185_v14, %v2388_v54 }
0x1a74   :  { %v3187_v16 = vpop.eup %3186 }
0x1a75   :  { %v2410_v22 = vmul.f32 %v2409_v13, %v2404_v15  ;;  %v2405_v60 = vmul.f32 %v3187_v16, %v2389_v43 }
0x1a77   :  { %v2411_v23 = vmul.f32 %v2409_v13, %v2405_v60  ;;  %v2416_v25 = vadd.f32 %v2415_v17, %v2410_v22 }
0x1a79   :  { %v2417_v28 = vadd.f32 %v2415_v17, %v2411_v23 }
0x1a7b   :  { %v2418_v31 = vpack.c.bf16 %v2417_v28, %v2416_v25 }
0x1a7d   :  { %3012 = vmatmul.mubr.msk.bf16.vlgmr.msra.gmra.mrb[80].mxu1 %vm150_vm1, %v2418_v31 }
0x1b50   :  { %v2472_v34 = vpop.f32.mrb[80].mxu1 }
0x1b51   :  { %v2473_v12 = vadd.f32 %v2472_v34, %v2422_v33  ;;  %v3013_v37 = vpop.f32.mrb[81].mxu1 }
0x1b52   :  { %v2475_v39 = vpop.f32.mrb[82].mxu1 }
0x1b53   :  { %v2476_v40 = vadd.f32 %v2475_v39, %v2422_v33  ;;  %v3014_v41 = vpop.f32.mrb[83].mxu1  ;;  %v2479_v42 = vmax.f32 %v2473_v12, 0.0 }
0x1b55   :  { %v2480_v46 = vmax.f32 %v2476_v40, 0.0 }
0x1b57   :  { %v2481_v47 = vpack.c.bf16 %v2480_v46, %v2479_v42 }
0x1b59   :  { %3024 = vmatmul.mubr.msk.bf16.vlgmr.msra.gmra.mrb[68].mxu0 %vm182_vm2, %v2481_v47 }
0x1c2c   :  { %v2547_v50 = vpop.f32.mrb[68].mxu0 }
0x1c2d   :  { %v2548_v2 = vadd.f32 %v2547_v50, %v2485_v0  ;;  %v3025_v8 = vpop.f32.mrb[69].mxu0 }
0x1c2e   :  { %v2550_v27 = vpop.f32.mrb[70].mxu0 }
0x1c2f   :  { %v2551_v52 = vadd.f32 %v2550_v27, %v2485_v0  ;;  %v3026_v30 = vpop.f32.mrb[71].mxu0  ;;  %v2554_v24 = vadd.f32 %v2548_v2, %v2416_v25 }
0x1c31   :  { %v2556_v26 = vsel %vm150_vm1, %v2554_v24, 0.0  ;;  %v2555_v55 = vadd.f32 %v2551_v52, %v2417_v28 }
0x1c32   :  { %2557 = vadd.xlane.f32.xlu0 %v2556_v26 }
0x1c33   :  { %v2559_v56 = vsel %vm150_vm1, %v2555_v55, 0.0 }
0x1c34   :  { %2560 = vadd.xlane.f32.xlu1 %v2559_v56 }
0x1cbf   :  { %v2558_v57 = vpop.xlane.xlu0 %2557 }
0x1cc0   :  { %v2562_v58 = vmul.f32 0.03125, %v2558_v57 }
0x1cc1   :  { %v2561_v59 = vpop.xlane.xlu1 %2560 }
0x1cc2   :  { %v2564_v35 = vsub.f32 %v2554_v24, %v2562_v58  ;;  %v2563_v38 = vmul.f32 0.03125, %v2561_v59 }
0x1cc4   :  { %v2565_v51 = vsub.f32 %v2555_v55, %v2563_v38  ;;  %v2566_v21 = vmul.f32 %v2564_v35, %v2564_v35 }
0x1cc6   :  { %v2568_v54 = vsel %vm150_vm1, %v2566_v21, 0.0  ;;  %v2567_v62 = vmul.f32 %v2565_v51, %v2565_v51 }
0x1cc7   :  { %2569 = vadd.xlane.f32.xlu0 %v2568_v54 }
0x1cc8   :  { %v2571_v43 = vsel %vm150_vm1, %v2567_v62, 0.0 }
0x1cc9   :  { %2572 = vadd.xlane.f32.xlu1 %v2571_v43 }
0x1d54   :  { %v2570_v49 = vpop.xlane.xlu0 %2569 }
0x1d55   :  { %v2574_v1 = vmul.f32 0.03125, %v2570_v49 }
0x1d56   :  { %v2573_v63 = vpop.xlane.xlu1 %2572 }
0x1d57   :  { %v2576_v44 = vadd.f32 1e-05, %v2574_v1  ;;  %v2575_v3 = vmul.f32 0.03125, %v2573_v63 }
0x1d59   :  { %3188 = vrsqrt.f32 %v2576_v44  ;;  %v2577_v45 = vadd.f32 1e-05, %v2575_v3 }
0x1d5b   :  { %3190 = vrsqrt.f32 %v2577_v45 }
0x1d63   :  { %v3189_v5 = vpop.eup %3188 }
0x1d64   :  { %v2580_v7 = vmul.f32 %v3189_v5, %v2564_v35 }
0x1d65   :  { %v3191_v10 = vpop.eup %3190 }
0x1d66   :  { %v2581_v61 = vmul.f32 %v3191_v10, %v2565_v51  ;;  %v2586_v53 = vmul.f32 %v2585_v4, %v2580_v7 }
0x1d68   :  { %v2587_v11 = vmul.f32 %v2585_v4, %v2581_v61  ;;  %v2592_v13 = vadd.f32 %v2591_v6, %v2586_v53 }
0x1d6a   :  { %v2593_v14 = vadd.f32 %v2591_v6, %v2587_v11  ;;  %2594 = vst.msk [vmem:[#allocation10] sm:$0xff] %vm150_vm1, %v2592_v13 }
0x1d6c   :  { %2595 = vst.msk [vmem:[#allocation10 + $0x8] sm:$0xff] %vm150_vm1, %v2593_v14 }
0x1d6d   :  { %3292 = shalt.err (!%p3289_p8)
}
0x1d6e   :  { %s3293_s4 = scalar_lea.hbm %s3955_s6, 256 }
0x1d6f   :  { %p3294_p9 = scmp.ne.s32.totalorder %s3955_s6, %s3293_s4  ;;  %p3297_p10 = scmp.lt.u32.totalorder %s3293_s4, %s3955_s6 }
0x1d71   :  { %p3299_p11 = pnand %p3297_p10, %p3294_p9 }
0x1d73   :  { %3302 = shalt.err (!%p3299_p11)
}
0x1d74   :  { %2607 = dma.vmem_to_hbm [thread:$0]  %s2602_s3, 256, %s3955_s6, [#allocation4], %s3313_s9, %s3313_s9, %s3314_s10  }
0x1d75   :  { %3309 = dma.done.wait [#allocation4], 256  }
0x1d76   :  { %3310 = vsyncadd [#allocation4], 4294967040 }
0x1d77   :  { %2611 = vsyncpa [#allocation3], 1 }
0x1d78   :  { %2612 = vsyncpa [#allocation6], 1 }
0x1d79   :  { %2613 = vsyncpa [#allocation9], 1 }
0x1d7a   :  { %2614 = vsyncpa [#allocation4], 1 }

</bundles_post_ra>
